<compile_context>
chip_gen: v6e
topology: v6e:2x2x1
jax: 0.10.0
libtpu: 0.0.40
codegen_flags: <defaults>
</compile_context>

<pallas_src>
import jax
import jax.numpy as jnp
from jax import lax
from jax.experimental import pallas as pl
from jax.experimental.pallas import tpu as pltpu

INPUT_SIZE = 8      # len(features)
HIDDEN_SIZE = 50
OUTPUT_SIZE = 1

# TPU-native padding
BP = 8       # batch padded to sublane width
HP = 128     # hidden padded to lane width (per gate)
LANES = 128  # lane-dense prediction slab width

_HIGHEST = jax.lax.Precision.HIGHEST


def _lstm_fc_kernel(xp_ref, whh_ref, wfc_ref, bfc_ref, h0_ref, c0_ref,
                    pred_ref, hout_ref, cout_ref, h_all_sc):
    """Single-invocation LSTM recurrence + deferred lane-dense FC head.

    xp_ref   : (T, BP, 4*HP) f32   pre-projected inputs x@W_ih + b, gate-lane padded
    whh_ref  : (HP, 4*HP)   bf16   recurrent weights, gate-lane padded
    wfc_ref  : (HP, LANES)  f32    fc weight in lane 0, other lanes zero
    bfc_ref  : (1, 1)       f32    fc bias (SMEM scalar)
    h0/c0    : (BP, HP)     f32    zero-padded initial state (aliased to hout/cout)
    pred_ref : (T*BP, LANES) f32   lane-dense prediction slab (lane 0 is the output)
    hout/cout: (BP, HP)     f32    final hidden / cell state
    h_all_sc : (T, BP, HP)  f32    VMEM scratch holding every step's hidden state
    """
    T, bp = xp_ref.shape[0], xp_ref.shape[1]

    # Recurrent weight loaded once; stays resident in vregs across all T steps.
    whh = whh_ref[...]                                            # (HP, 4*HP) bf16

    def step(t, carry):
        h, c = carry
        # Only the recurrent term sits on the serial chain: K=128, single-pass bf16
        # MXU matmul with f32 accumulation.
        gates = xp_ref[t] + jnp.dot(h.astype(jnp.bfloat16), whh,
                                    preferred_element_type=jnp.float32)  # (BP, 4*HP)
        # 128-lane-aligned gate slices, PyTorch order [i, f, g, o].
        # sigmoid(x) = 0.5*tanh(0.5*x) + 0.5  -> exactly one EUP push per gate.
        i_g = 0.5 * jnp.tanh(0.5 * gates[:, 0 * HP:1 * HP]) + 0.5
        f_g = 0.5 * jnp.tanh(0.5 * gates[:, 1 * HP:2 * HP]) + 0.5
        g_g = jnp.tanh(gates[:, 2 * HP:3 * HP])
        o_g = 0.5 * jnp.tanh(0.5 * gates[:, 3 * HP:4 * HP]) + 0.5
        c_new = f_g * c + i_g * g_g
        h_new = o_g * jnp.tanh(c_new)
        h_all_sc[t] = h_new                        # single per-step store (1 vst slot)
        return h_new, c_new

    h_fin, c_fin = lax.fori_loop(0, T, step, (h0_ref[...], c0_ref[...]),
                                 unroll=True)
    hout_ref[...] = h_fin
    cout_ref[...] = c_fin

    # Deferred FC head: one off-critical-path MXU matmul + one unmasked lane-dense
    # slab store (wrapper takes lane 0).
    h_flat = h_all_sc[...].reshape(T * bp, HP)                    # (T*BP, HP)
    pred_ref[...] = (jnp.dot(h_flat, wfc_ref[...], precision=_HIGHEST,
                             preferred_element_type=jnp.float32)
                     + bfc_ref[0, 0])                             # (T*BP, LANES)


def prepare_params(params):
    """One-time TPU-native layout prep (NOT on the per-call path):
    gate-lane padding to HP lanes per gate, bf16 cast of the recurrent weight,
    lane-dense fc weight column."""
    I = params["w_ih"].shape[0]
    H = params["w_hh"].shape[0]
    assert I <= HP and H <= HP
    w_ih_p = jnp.zeros((I, 4 * HP), jnp.float32)
    w_hh_p = jnp.zeros((HP, 4 * HP), jnp.float32)
    b_p = jnp.zeros((4 * HP,), jnp.float32)
    for k in range(4):
        w_ih_p = w_ih_p.at[:, k * HP:k * HP + H].set(
            params["w_ih"][:, k * H:(k + 1) * H])
        w_hh_p = w_hh_p.at[:H, k * HP:k * HP + H].set(
            params["w_hh"][:, k * H:(k + 1) * H])
        b_p = b_p.at[k * HP:k * HP + H].set(params["b"][k * H:(k + 1) * H])
    wfc_p = jnp.zeros((HP, LANES), jnp.float32).at[:H, 0].set(params["w_fc"][:, 0])
    return {
        "w_ih_pad": w_ih_p,                        # (I, 4*HP) f32 — wrapper x-projection
        "b_pad": b_p,                              # (4*HP,)   f32
        "w_hh_pad": w_hh_p.astype(jnp.bfloat16),   # (HP, 4*HP) bf16 — kernel recurrence
        "w_fc_pad": wfc_p,                         # (HP, LANES) f32 — kernel epilogue
        "b_fc": params["b_fc"].reshape(1, 1).astype(jnp.float32),
    }


def sales_lstm_forward(x, hidden, prep):
    """x: (B, T, I) float32, hidden = (h0, c0) each (1, B, H), prep = prepare_params(...).

    Returns (predictions (B, T, 1), (h_n (1, B, H), c_n (1, B, H))).
    """
    B, T, I = x.shape
    H = hidden[0].shape[2]
    assert B <= BP and I <= HP and H <= HP

    # ---- layout plumbing + hoisted input projection (off the serial chain) ----
    x_tm = jnp.transpose(x, (1, 0, 2)).astype(jnp.float32)            # (T, B, I)
    x_p = jnp.zeros((T, BP, I), jnp.float32).at[:, :B, :].set(x_tm)   # pad batch
    x_proj = jnp.einsum("tbi,ig->tbg", x_p, prep["w_ih_pad"],
                        precision=_HIGHEST) + prep["b_pad"]           # (T, BP, 4*HP)

    h0_p = jnp.zeros((BP, HP), jnp.float32).at[:B, :H].set(hidden[0][0])
    c0_p = jnp.zeros((BP, HP), jnp.float32).at[:B, :H].set(hidden[1][0])

    vmem = pl.BlockSpec(memory_space=pltpu.MemorySpace.VMEM)
    smem = pl.BlockSpec(memory_space=pltpu.MemorySpace.SMEM)

    preds_slab, h_n_p, c_n_p = pl.pallas_call(
        _lstm_fc_kernel,
        out_shape=(
            jax.ShapeDtypeStruct((T * BP, LANES), jnp.float32),
            jax.ShapeDtypeStruct((BP, HP), jnp.float32),
            jax.ShapeDtypeStruct((BP, HP), jnp.float32),
        ),
        in_specs=[
            vmem,   # x_proj
            vmem,   # W_hh (bf16, gate-padded)
            vmem,   # fc weight (lane-dense column)
            smem,   # fc bias scalar
            vmem,   # h0
            vmem,   # c0
        ],
        out_specs=(vmem, vmem, vmem),
        scratch_shapes=[pltpu.VMEM((T, BP, HP), jnp.float32)],
        input_output_aliases={4: 1, 5: 2},   # h0 -> h_n, c0 -> c_n buffers
    )(x_proj, prep["w_hh_pad"], prep["w_fc_pad"], prep["b_fc"], h0_p, c0_p)

    preds = preds_slab.reshape(T, BP, LANES)[:, :B, 0]                # (T, B)
    preds = jnp.transpose(preds, (1, 0))[..., None]                   # (B, T, 1)
    h_n = h_n_p[:B, :H][None]
    c_n = c_n_p[:B, :H][None]
    return preds, (h_n, c_n)


def init_params(key, input_size, hidden_size, output_size):
    """PyTorch-style uniform init U(-1/sqrt(H), 1/sqrt(H)); deterministic."""
    k = 1.0 / jnp.sqrt(hidden_size)
    keys = jax.random.split(key, 6)
    u = lambda kk, shape: jax.random.uniform(kk, shape, jnp.float32, -k, k)
    # PyTorch stores weight_ih as (4H, I); we store the transpose for right-matmul.
    w_ih = u(keys[0], (4 * hidden_size, input_size)).T
    w_hh = u(keys[1], (4 * hidden_size, hidden_size)).T
    b = u(keys[2], (4 * hidden_size,)) + u(keys[3], (4 * hidden_size,))  # b_ih + b_hh
    w_fc = u(keys[4], (output_size, hidden_size)).T
    b_fc = u(keys[5], (output_size,))
    return {"w_ih": w_ih, "w_hh": w_hh, "b": b, "w_fc": w_fc, "b_fc": b_fc}


def _reference_forward(x, hidden, params):
    """Pure-JAX reference mirroring nn.LSTM(batch_first=True) + nn.Linear, with the
    same precision choice as the kernel (bf16 recurrent matmul, f32 accumulation,
    f32/HIGHEST everywhere else) so the tolerance check validates kernel plumbing."""
    B, T, _ = x.shape
    H = params["w_hh"].shape[0]
    x_proj = jnp.einsum("bti,ig->btg", x, params["w_ih"],
                        precision=_HIGHEST) + params["b"]             # (B, T, 4H)
    whh_bf = params["w_hh"].astype(jnp.bfloat16)
    h, c = hidden[0][0], hidden[1][0]
    outs = []
    for t in range(T):
        gates = x_proj[:, t] + jnp.dot(h.astype(jnp.bfloat16), whh_bf,
                                       preferred_element_type=jnp.float32)
        i_g = 0.5 * jnp.tanh(0.5 * gates[:, 0 * H:1 * H]) + 0.5
        f_g = 0.5 * jnp.tanh(0.5 * gates[:, 1 * H:2 * H]) + 0.5
        g_g = jnp.tanh(gates[:, 2 * H:3 * H])
        o_g = 0.5 * jnp.tanh(0.5 * gates[:, 3 * H:4 * H]) + 0.5
        c = f_g * c + i_g * g_g
        h = o_g * jnp.tanh(c)
        outs.append(h)
    lstm_out = jnp.stack(outs, axis=1)
    preds = jnp.dot(lstm_out, params["w_fc"], precision=_HIGHEST) + params["b_fc"]
    return preds, (h[None], c[None])


if __name__ == "__main__":
    B, T = 2, 8
    key = jax.random.PRNGKey(0)
    k_x, k_h, k_c, k_p = jax.random.split(key, 4)

    x = jax.random.normal(k_x, (B, T, INPUT_SIZE), jnp.float32)
    h0 = jax.random.normal(k_h, (1, B, HIDDEN_SIZE), jnp.float32)
    c0 = jax.random.normal(k_c, (1, B, HIDDEN_SIZE), jnp.float32)
    params = init_params(k_p, INPUT_SIZE, HIDDEN_SIZE, OUTPUT_SIZE)
    prep = prepare_params(params)   # one-time padding/fusion, off the per-call path

    fwd = jax.jit(sales_lstm_forward)
    preds, (h_n, c_n) = fwd(x, (h0, c0), prep)
    jax.block_until_ready((preds, h_n, c_n))

    # sanity check vs. precision-mirrored pure-JAX reference
    ref_preds, (ref_h, ref_c) = _reference_forward(x, (h0, c0), params)
    assert preds.shape == (B, T, OUTPUT_SIZE)
    assert h_n.shape == (1, B, HIDDEN_SIZE) and c_n.shape == (1, B, HIDDEN_SIZE)
    assert jnp.allclose(preds, ref_preds, atol=1e-3, rtol=1e-3)
    assert jnp.allclose(h_n, ref_h, atol=1e-3, rtol=1e-3)
    assert jnp.allclose(c_n, ref_c, atol=1e-3, rtol=1e-3)

    print("KERNEL_OK")
</pallas_src>

<mosaic_0001>
module attributes {stable_mosaic.version = 11 : i64} {
  func.func @_lstm_fc_kernel(%arg0: memref<8x8x512xf32, #tpu.memory_space<vmem>>, %arg1: memref<128x512xbf16, #tpu.memory_space<vmem>>, %arg2: memref<128x128xf32, #tpu.memory_space<vmem>>, %arg3: memref<1x1xf32, #tpu.memory_space<smem>>, %arg4: memref<8x128xf32, #tpu.memory_space<vmem>>, %arg5: memref<8x128xf32, #tpu.memory_space<vmem>>, %arg6: memref<64x128xf32, #tpu.memory_space<vmem>>, %arg7: memref<8x128xf32, #tpu.memory_space<vmem>>, %arg8: memref<8x128xf32, #tpu.memory_space<vmem>>, %arg9: memref<8x8x128xf32, #tpu.memory_space<vmem>>) attributes {dimension_semantics = [], scalar_prefetch = 0 : i64, scratch_operands = 1 : i64, tpu.core_type = #tpu.core_type<tc>} {
    %c0 = arith.constant 0 : index
    %c0_0 = arith.constant 0 : index
    %0 = vector.load %arg1[%c0, %c0_0] : memref<128x512xbf16, #tpu.memory_space<vmem>>, vector<128x512xbf16>
    %c0_1 = arith.constant 0 : index
    %c0_2 = arith.constant 0 : index
    %1 = vector.load %arg4[%c0_1, %c0_2] : memref<8x128xf32, #tpu.memory_space<vmem>>, vector<8x128xf32>
    %c0_3 = arith.constant 0 : index
    %c0_4 = arith.constant 0 : index
    %2 = vector.load %arg5[%c0_3, %c0_4] : memref<8x128xf32, #tpu.memory_space<vmem>>, vector<8x128xf32>
    %c0_i32 = arith.constant 0 : i32
    %3 = arith.index_cast %c0_i32 : i32 to index
    %c0_5 = arith.constant 0 : index
    %c0_6 = arith.constant 0 : index
    %4 = vector.load %arg0[%3, %c0_5, %c0_6] : memref<8x8x512xf32, #tpu.memory_space<vmem>>, vector<1x8x512xf32>
    %5 = vector.shape_cast %4 : vector<1x8x512xf32> to vector<8x512xf32>
    %6 = arith.truncf %1 : vector<8x128xf32> to vector<8x128xbf16>
    %cst = arith.constant dense<0.000000e+00> : vector<8x512xf32>
    %7 = tpu.matmul %6, %0, %cst {dimension_numbers = #tpu.dot_dimension_numbers<[1], [0], [0], [1], [0, 0, 1, 1], [], []>} : vector<8x128xbf16>, vector<128x512xbf16>, vector<8x512xf32> -> vector<8x512xf32>
    %8 = arith.addf %5, %7 : vector<8x512xf32>
    %9 = vector.extract_strided_slice %8 {offsets = [0, 0], sizes = [8, 128], strides = [1, 1]} : vector<8x512xf32> to vector<8x128xf32>
    %cst_7 = arith.constant 5.000000e-01 : f32
    %10 = vector.broadcast %cst_7 : f32 to vector<8x128xf32>
    %11 = arith.mulf %10, %9 : vector<8x128xf32>
    %12 = math.tanh %11 : vector<8x128xf32>
    %cst_8 = arith.constant 5.000000e-01 : f32
    %13 = vector.broadcast %cst_8 : f32 to vector<8x128xf32>
    %14 = arith.mulf %13, %12 : vector<8x128xf32>
    %cst_9 = arith.constant 5.000000e-01 : f32
    %15 = vector.broadcast %cst_9 : f32 to vector<8x128xf32>
    %16 = arith.addf %14, %15 : vector<8x128xf32>
    %17 = vector.extract_strided_slice %8 {offsets = [0, 128], sizes = [8, 128], strides = [1, 1]} : vector<8x512xf32> to vector<8x128xf32>
    %cst_10 = arith.constant 5.000000e-01 : f32
    %18 = vector.broadcast %cst_10 : f32 to vector<8x128xf32>
    %19 = arith.mulf %18, %17 : vector<8x128xf32>
    %20 = math.tanh %19 : vector<8x128xf32>
    %cst_11 = arith.constant 5.000000e-01 : f32
    %21 = vector.broadcast %cst_11 : f32 to vector<8x128xf32>
    %22 = arith.mulf %21, %20 : vector<8x128xf32>
    %cst_12 = arith.constant 5.000000e-01 : f32
    %23 = vector.broadcast %cst_12 : f32 to vector<8x128xf32>
    %24 = arith.addf %22, %23 : vector<8x128xf32>
    %25 = vector.extract_strided_slice %8 {offsets = [0, 256], sizes = [8, 128], strides = [1, 1]} : vector<8x512xf32> to vector<8x128xf32>
    %26 = math.tanh %25 : vector<8x128xf32>
    %27 = vector.extract_strided_slice %8 {offsets = [0, 384], sizes = [8, 128], strides = [1, 1]} : vector<8x512xf32> to vector<8x128xf32>
    %cst_13 = arith.constant 5.000000e-01 : f32
    %28 = vector.broadcast %cst_13 : f32 to vector<8x128xf32>
    %29 = arith.mulf %28, %27 : vector<8x128xf32>
    %30 = math.tanh %29 : vector<8x128xf32>
    %cst_14 = arith.constant 5.000000e-01 : f32
    %31 = vector.broadcast %cst_14 : f32 to vector<8x128xf32>
    %32 = arith.mulf %31, %30 : vector<8x128xf32>
    %cst_15 = arith.constant 5.000000e-01 : f32
    %33 = vector.broadcast %cst_15 : f32 to vector<8x128xf32>
    %34 = arith.addf %32, %33 : vector<8x128xf32>
    %35 = arith.mulf %24, %2 : vector<8x128xf32>
    %36 = arith.mulf %16, %26 : vector<8x128xf32>
    %37 = arith.addf %35, %36 : vector<8x128xf32>
    %38 = math.tanh %37 : vector<8x128xf32>
    %39 = arith.mulf %34, %38 : vector<8x128xf32>
    %40 = arith.index_cast %c0_i32 : i32 to index
    %c0_16 = arith.constant 0 : index
    %c0_17 = arith.constant 0 : index
    %41 = vector.load %arg9[%40, %c0_16, %c0_17] : memref<8x8x128xf32, #tpu.memory_space<vmem>>, vector<1x8x128xf32>
    %42 = vector.shape_cast %41 : vector<1x8x128xf32> to vector<8x128xf32>
    %43 = vector.shape_cast %39 : vector<8x128xf32> to vector<1x8x128xf32>
    tpu.vector_store %arg9[%40, %c0_16, %c0_17], %43 {strides = array<i32>} : memref<8x8x128xf32, #tpu.memory_space<vmem>>, vector<1x8x128xf32>,
    %c1_i32 = arith.constant 1 : i32
    %44 = arith.index_cast %c1_i32 : i32 to index
    %c0_18 = arith.constant 0 : index
    %c0_19 = arith.constant 0 : index
    %45 = vector.load %arg0[%44, %c0_18, %c0_19] : memref<8x8x512xf32, #tpu.memory_space<vmem>>, vector<1x8x512xf32>
    %46 = vector.shape_cast %45 : vector<1x8x512xf32> to vector<8x512xf32>
    %47 = arith.truncf %39 : vector<8x128xf32> to vector<8x128xbf16>
    %cst_20 = arith.constant dense<0.000000e+00> : vector<8x512xf32>
    %48 = tpu.matmul %47, %0, %cst_20 {dimension_numbers = #tpu.dot_dimension_numbers<[1], [0], [0], [1], [0, 0, 1, 1], [], []>} : vector<8x128xbf16>, vector<128x512xbf16>, vector<8x512xf32> -> vector<8x512xf32>
    %49 = arith.addf %46, %48 : vector<8x512xf32>
    %50 = vector.extract_strided_slice %49 {offsets = [0, 0], sizes = [8, 128], strides = [1, 1]} : vector<8x512xf32> to vector<8x128xf32>
    %cst_21 = arith.constant 5.000000e-01 : f32
    %51 = vector.broadcast %cst_21 : f32 to vector<8x128xf32>
    %52 = arith.mulf %51, %50 : vector<8x128xf32>
    %53 = math.tanh %52 : vector<8x128xf32>
    %cst_22 = arith.constant 5.000000e-01 : f32
    %54 = vector.broadcast %cst_22 : f32 to vector<8x128xf32>
    %55 = arith.mulf %54, %53 : vector<8x128xf32>
    %cst_23 = arith.constant 5.000000e-01 : f32
    %56 = vector.broadcast %cst_23 : f32 to vector<8x128xf32>
    %57 = arith.addf %55, %56 : vector<8x128xf32>
    %58 = vector.extract_strided_slice %49 {offsets = [0, 128], sizes = [8, 128], strides = [1, 1]} : vector<8x512xf32> to vector<8x128xf32>
    %cst_24 = arith.constant 5.000000e-01 : f32
    %59 = vector.broadcast %cst_24 : f32 to vector<8x128xf32>
    %60 = arith.mulf %59, %58 : vector<8x128xf32>
    %61 = math.tanh %60 : vector<8x128xf32>
    %cst_25 = arith.constant 5.000000e-01 : f32
    %62 = vector.broadcast %cst_25 : f32 to vector<8x128xf32>
    %63 = arith.mulf %62, %61 : vector<8x128xf32>
    %cst_26 = arith.constant 5.000000e-01 : f32
    %64 = vector.broadcast %cst_26 : f32 to vector<8x128xf32>
    %65 = arith.addf %63, %64 : vector<8x128xf32>
    %66 = vector.extract_strided_slice %49 {offsets = [0, 256], sizes = [8, 128], strides = [1, 1]} : vector<8x512xf32> to vector<8x128xf32>
    %67 = math.tanh %66 : vector<8x128xf32>
    %68 = vector.extract_strided_slice %49 {offsets = [0, 384], sizes = [8, 128], strides = [1, 1]} : vector<8x512xf32> to vector<8x128xf32>
    %cst_27 = arith.constant 5.000000e-01 : f32
    %69 = vector.broadcast %cst_27 : f32 to vector<8x128xf32>
    %70 = arith.mulf %69, %68 : vector<8x128xf32>
    %71 = math.tanh %70 : vector<8x128xf32>
    %cst_28 = arith.constant 5.000000e-01 : f32
    %72 = vector.broadcast %cst_28 : f32 to vector<8x128xf32>
    %73 = arith.mulf %72, %71 : vector<8x128xf32>
    %cst_29 = arith.constant 5.000000e-01 : f32
    %74 = vector.broadcast %cst_29 : f32 to vector<8x128xf32>
    %75 = arith.addf %73, %74 : vector<8x128xf32>
    %76 = arith.mulf %65, %37 : vector<8x128xf32>
    %77 = arith.mulf %57, %67 : vector<8x128xf32>
    %78 = arith.addf %76, %77 : vector<8x128xf32>
    %79 = math.tanh %78 : vector<8x128xf32>
    %80 = arith.mulf %75, %79 : vector<8x128xf32>
    %81 = arith.index_cast %c1_i32 : i32 to index
    %c0_30 = arith.constant 0 : index
    %c0_31 = arith.constant 0 : index
    %82 = vector.load %arg9[%81, %c0_30, %c0_31] : memref<8x8x128xf32, #tpu.memory_space<vmem>>, vector<1x8x128xf32>
    %83 = vector.shape_cast %82 : vector<1x8x128xf32> to vector<8x128xf32>
    %84 = vector.shape_cast %80 : vector<8x128xf32> to vector<1x8x128xf32>
    tpu.vector_store %arg9[%81, %c0_30, %c0_31], %84 {strides = array<i32>} : memref<8x8x128xf32, #tpu.memory_space<vmem>>, vector<1x8x128xf32>,
    %c2_i32 = arith.constant 2 : i32
    %85 = arith.index_cast %c2_i32 : i32 to index
    %c0_32 = arith.constant 0 : index
    %c0_33 = arith.constant 0 : index
    %86 = vector.load %arg0[%85, %c0_32, %c0_33] : memref<8x8x512xf32, #tpu.memory_space<vmem>>, vector<1x8x512xf32>
    %87 = vector.shape_cast %86 : vector<1x8x512xf32> to vector<8x512xf32>
    %88 = arith.truncf %80 : vector<8x128xf32> to vector<8x128xbf16>
    %cst_34 = arith.constant dense<0.000000e+00> : vector<8x512xf32>
    %89 = tpu.matmul %88, %0, %cst_34 {dimension_numbers = #tpu.dot_dimension_numbers<[1], [0], [0], [1], [0, 0, 1, 1], [], []>} : vector<8x128xbf16>, vector<128x512xbf16>, vector<8x512xf32> -> vector<8x512xf32>
    %90 = arith.addf %87, %89 : vector<8x512xf32>
    %91 = vector.extract_strided_slice %90 {offsets = [0, 0], sizes = [8, 128], strides = [1, 1]} : vector<8x512xf32> to vector<8x128xf32>
    %cst_35 = arith.constant 5.000000e-01 : f32
    %92 = vector.broadcast %cst_35 : f32 to vector<8x128xf32>
    %93 = arith.mulf %92, %91 : vector<8x128xf32>
    %94 = math.tanh %93 : vector<8x128xf32>
    %cst_36 = arith.constant 5.000000e-01 : f32
    %95 = vector.broadcast %cst_36 : f32 to vector<8x128xf32>
    %96 = arith.mulf %95, %94 : vector<8x128xf32>
    %cst_37 = arith.constant 5.000000e-01 : f32
    %97 = vector.broadcast %cst_37 : f32 to vector<8x128xf32>
    %98 = arith.addf %96, %97 : vector<8x128xf32>
    %99 = vector.extract_strided_slice %90 {offsets = [0, 128], sizes = [8, 128], strides = [1, 1]} : vector<8x512xf32> to vector<8x128xf32>
    %cst_38 = arith.constant 5.000000e-01 : f32
    %100 = vector.broadcast %cst_38 : f32 to vector<8x128xf32>
    %101 = arith.mulf %100, %99 : vector<8x128xf32>
    %102 = math.tanh %101 : vector<8x128xf32>
    %cst_39 = arith.constant 5.000000e-01 : f32
    %103 = vector.broadcast %cst_39 : f32 to vector<8x128xf32>
    %104 = arith.mulf %103, %102 : vector<8x128xf32>
    %cst_40 = arith.constant 5.000000e-01 : f32
    %105 = vector.broadcast %cst_40 : f32 to vector<8x128xf32>
    %106 = arith.addf %104, %105 : vector<8x128xf32>
    %107 = vector.extract_strided_slice %90 {offsets = [0, 256], sizes = [8, 128], strides = [1, 1]} : vector<8x512xf32> to vector<8x128xf32>
    %108 = math.tanh %107 : vector<8x128xf32>
    %109 = vector.extract_strided_slice %90 {offsets = [0, 384], sizes = [8, 128], strides = [1, 1]} : vector<8x512xf32> to vector<8x128xf32>
    %cst_41 = arith.constant 5.000000e-01 : f32
    %110 = vector.broadcast %cst_41 : f32 to vector<8x128xf32>
    %111 = arith.mulf %110, %109 : vector<8x128xf32>
    %112 = math.tanh %111 : vector<8x128xf32>
    %cst_42 = arith.constant 5.000000e-01 : f32
    %113 = vector.broadcast %cst_42 : f32 to vector<8x128xf32>
    %114 = arith.mulf %113, %112 : vector<8x128xf32>
    %cst_43 = arith.constant 5.000000e-01 : f32
    %115 = vector.broadcast %cst_43 : f32 to vector<8x128xf32>
    %116 = arith.addf %114, %115 : vector<8x128xf32>
    %117 = arith.mulf %106, %78 : vector<8x128xf32>
    %118 = arith.mulf %98, %108 : vector<8x128xf32>
    %119 = arith.addf %117, %118 : vector<8x128xf32>
    %120 = math.tanh %119 : vector<8x128xf32>
    %121 = arith.mulf %116, %120 : vector<8x128xf32>
    %122 = arith.index_cast %c2_i32 : i32 to index
    %c0_44 = arith.constant 0 : index
    %c0_45 = arith.constant 0 : index
    %123 = vector.load %arg9[%122, %c0_44, %c0_45] : memref<8x8x128xf32, #tpu.memory_space<vmem>>, vector<1x8x128xf32>
    %124 = vector.shape_cast %123 : vector<1x8x128xf32> to vector<8x128xf32>
    %125 = vector.shape_cast %121 : vector<8x128xf32> to vector<1x8x128xf32>
    tpu.vector_store %arg9[%122, %c0_44, %c0_45], %125 {strides = array<i32>} : memref<8x8x128xf32, #tpu.memory_space<vmem>>, vector<1x8x128xf32>,
    %c3_i32 = arith.constant 3 : i32
    %126 = arith.index_cast %c3_i32 : i32 to index
    %c0_46 = arith.constant 0 : index
    %c0_47 = arith.constant 0 : index
    %127 = vector.load %arg0[%126, %c0_46, %c0_47] : memref<8x8x512xf32, #tpu.memory_space<vmem>>, vector<1x8x512xf32>
    %128 = vector.shape_cast %127 : vector<1x8x512xf32> to vector<8x512xf32>
    %129 = arith.truncf %121 : vector<8x128xf32> to vector<8x128xbf16>
    %cst_48 = arith.constant dense<0.000000e+00> : vector<8x512xf32>
    %130 = tpu.matmul %129, %0, %cst_48 {dimension_numbers = #tpu.dot_dimension_numbers<[1], [0], [0], [1], [0, 0, 1, 1], [], []>} : vector<8x128xbf16>, vector<128x512xbf16>, vector<8x512xf32> -> vector<8x512xf32>
    %131 = arith.addf %128, %130 : vector<8x512xf32>
    %132 = vector.extract_strided_slice %131 {offsets = [0, 0], sizes = [8, 128], strides = [1, 1]} : vector<8x512xf32> to vector<8x128xf32>
    %cst_49 = arith.constant 5.000000e-01 : f32
    %133 = vector.broadcast %cst_49 : f32 to vector<8x128xf32>
    %134 = arith.mulf %133, %132 : vector<8x128xf32>
    %135 = math.tanh %134 : vector<8x128xf32>
    %cst_50 = arith.constant 5.000000e-01 : f32
    %136 = vector.broadcast %cst_50 : f32 to vector<8x128xf32>
    %137 = arith.mulf %136, %135 : vector<8x128xf32>
    %cst_51 = arith.constant 5.000000e-01 : f32
    %138 = vector.broadcast %cst_51 : f32 to vector<8x128xf32>
    %139 = arith.addf %137, %138 : vector<8x128xf32>
    %140 = vector.extract_strided_slice %131 {offsets = [0, 128], sizes = [8, 128], strides = [1, 1]} : vector<8x512xf32> to vector<8x128xf32>
    %cst_52 = arith.constant 5.000000e-01 : f32
    %141 = vector.broadcast %cst_52 : f32 to vector<8x128xf32>
    %142 = arith.mulf %141, %140 : vector<8x128xf32>
    %143 = math.tanh %142 : vector<8x128xf32>
    %cst_53 = arith.constant 5.000000e-01 : f32
    %144 = vector.broadcast %cst_53 : f32 to vector<8x128xf32>
    %145 = arith.mulf %144, %143 : vector<8x128xf32>
    %cst_54 = arith.constant 5.000000e-01 : f32
    %146 = vector.broadcast %cst_54 : f32 to vector<8x128xf32>
    %147 = arith.addf %145, %146 : vector<8x128xf32>
    %148 = vector.extract_strided_slice %131 {offsets = [0, 256], sizes = [8, 128], strides = [1, 1]} : vector<8x512xf32> to vector<8x128xf32>
    %149 = math.tanh %148 : vector<8x128xf32>
    %150 = vector.extract_strided_slice %131 {offsets = [0, 384], sizes = [8, 128], strides = [1, 1]} : vector<8x512xf32> to vector<8x128xf32>
    %cst_55 = arith.constant 5.000000e-01 : f32
    %151 = vector.broadcast %cst_55 : f32 to vector<8x128xf32>
    %152 = arith.mulf %151, %150 : vector<8x128xf32>
    %153 = math.tanh %152 : vector<8x128xf32>
    %cst_56 = arith.constant 5.000000e-01 : f32
    %154 = vector.broadcast %cst_56 : f32 to vector<8x128xf32>
    %155 = arith.mulf %154, %153 : vector<8x128xf32>
    %cst_57 = arith.constant 5.000000e-01 : f32
    %156 = vector.broadcast %cst_57 : f32 to vector<8x128xf32>
    %157 = arith.addf %155, %156 : vector<8x128xf32>
    %158 = arith.mulf %147, %119 : vector<8x128xf32>
    %159 = arith.mulf %139, %149 : vector<8x128xf32>
    %160 = arith.addf %158, %159 : vector<8x128xf32>
    %161 = math.tanh %160 : vector<8x128xf32>
    %162 = arith.mulf %157, %161 : vector<8x128xf32>
    %163 = arith.index_cast %c3_i32 : i32 to index
    %c0_58 = arith.constant 0 : index
    %c0_59 = arith.constant 0 : index
    %164 = vector.load %arg9[%163, %c0_58, %c0_59] : memref<8x8x128xf32, #tpu.memory_space<vmem>>, vector<1x8x128xf32>
    %165 = vector.shape_cast %164 : vector<1x8x128xf32> to vector<8x128xf32>
    %166 = vector.shape_cast %162 : vector<8x128xf32> to vector<1x8x128xf32>
    tpu.vector_store %arg9[%163, %c0_58, %c0_59], %166 {strides = array<i32>} : memref<8x8x128xf32, #tpu.memory_space<vmem>>, vector<1x8x128xf32>,
    %c4_i32 = arith.constant 4 : i32
    %167 = arith.index_cast %c4_i32 : i32 to index
    %c0_60 = arith.constant 0 : index
    %c0_61 = arith.constant 0 : index
    %168 = vector.load %arg0[%167, %c0_60, %c0_61] : memref<8x8x512xf32, #tpu.memory_space<vmem>>, vector<1x8x512xf32>
    %169 = vector.shape_cast %168 : vector<1x8x512xf32> to vector<8x512xf32>
    %170 = arith.truncf %162 : vector<8x128xf32> to vector<8x128xbf16>
    %cst_62 = arith.constant dense<0.000000e+00> : vector<8x512xf32>
    %171 = tpu.matmul %170, %0, %cst_62 {dimension_numbers = #tpu.dot_dimension_numbers<[1], [0], [0], [1], [0, 0, 1, 1], [], []>} : vector<8x128xbf16>, vector<128x512xbf16>, vector<8x512xf32> -> vector<8x512xf32>
    %172 = arith.addf %169, %171 : vector<8x512xf32>
    %173 = vector.extract_strided_slice %172 {offsets = [0, 0], sizes = [8, 128], strides = [1, 1]} : vector<8x512xf32> to vector<8x128xf32>
    %cst_63 = arith.constant 5.000000e-01 : f32
    %174 = vector.broadcast %cst_63 : f32 to vector<8x128xf32>
    %175 = arith.mulf %174, %173 : vector<8x128xf32>
    %176 = math.tanh %175 : vector<8x128xf32>
    %cst_64 = arith.constant 5.000000e-01 : f32
    %177 = vector.broadcast %cst_64 : f32 to vector<8x128xf32>
    %178 = arith.mulf %177, %176 : vector<8x128xf32>
    %cst_65 = arith.constant 5.000000e-01 : f32
    %179 = vector.broadcast %cst_65 : f32 to vector<8x128xf32>
    %180 = arith.addf %178, %179 : vector<8x128xf32>
    %181 = vector.extract_strided_slice %172 {offsets = [0, 128], sizes = [8, 128], strides = [1, 1]} : vector<8x512xf32> to vector<8x128xf32>
    %cst_66 = arith.constant 5.000000e-01 : f32
    %182 = vector.broadcast %cst_66 : f32 to vector<8x128xf32>
    %183 = arith.mulf %182, %181 : vector<8x128xf32>
    %184 = math.tanh %183 : vector<8x128xf32>
    %cst_67 = arith.constant 5.000000e-01 : f32
    %185 = vector.broadcast %cst_67 : f32 to vector<8x128xf32>
    %186 = arith.mulf %185, %184 : vector<8x128xf32>
    %cst_68 = arith.constant 5.000000e-01 : f32
    %187 = vector.broadcast %cst_68 : f32 to vector<8x128xf32>
    %188 = arith.addf %186, %187 : vector<8x128xf32>
    %189 = vector.extract_strided_slice %172 {offsets = [0, 256], sizes = [8, 128], strides = [1, 1]} : vector<8x512xf32> to vector<8x128xf32>
    %190 = math.tanh %189 : vector<8x128xf32>
    %191 = vector.extract_strided_slice %172 {offsets = [0, 384], sizes = [8, 128], strides = [1, 1]} : vector<8x512xf32> to vector<8x128xf32>
    %cst_69 = arith.constant 5.000000e-01 : f32
    %192 = vector.broadcast %cst_69 : f32 to vector<8x128xf32>
    %193 = arith.mulf %192, %191 : vector<8x128xf32>
    %194 = math.tanh %193 : vector<8x128xf32>
    %cst_70 = arith.constant 5.000000e-01 : f32
    %195 = vector.broadcast %cst_70 : f32 to vector<8x128xf32>
    %196 = arith.mulf %195, %194 : vector<8x128xf32>
    %cst_71 = arith.constant 5.000000e-01 : f32
    %197 = vector.broadcast %cst_71 : f32 to vector<8x128xf32>
    %198 = arith.addf %196, %197 : vector<8x128xf32>
    %199 = arith.mulf %188, %160 : vector<8x128xf32>
    %200 = arith.mulf %180, %190 : vector<8x128xf32>
    %201 = arith.addf %199, %200 : vector<8x128xf32>
    %202 = math.tanh %201 : vector<8x128xf32>
    %203 = arith.mulf %198, %202 : vector<8x128xf32>
    %204 = arith.index_cast %c4_i32 : i32 to index
    %c0_72 = arith.constant 0 : index
    %c0_73 = arith.constant 0 : index
    %205 = vector.load %arg9[%204, %c0_72, %c0_73] : memref<8x8x128xf32, #tpu.memory_space<vmem>>, vector<1x8x128xf32>
    %206 = vector.shape_cast %205 : vector<1x8x128xf32> to vector<8x128xf32>
    %207 = vector.shape_cast %203 : vector<8x128xf32> to vector<1x8x128xf32>
    tpu.vector_store %arg9[%204, %c0_72, %c0_73], %207 {strides = array<i32>} : memref<8x8x128xf32, #tpu.memory_space<vmem>>, vector<1x8x128xf32>,
    %c5_i32 = arith.constant 5 : i32
    %208 = arith.index_cast %c5_i32 : i32 to index
    %c0_74 = arith.constant 0 : index
    %c0_75 = arith.constant 0 : index
    %209 = vector.load %arg0[%208, %c0_74, %c0_75] : memref<8x8x512xf32, #tpu.memory_space<vmem>>, vector<1x8x512xf32>
    %210 = vector.shape_cast %209 : vector<1x8x512xf32> to vector<8x512xf32>
    %211 = arith.truncf %203 : vector<8x128xf32> to vector<8x128xbf16>
    %cst_76 = arith.constant dense<0.000000e+00> : vector<8x512xf32>
    %212 = tpu.matmul %211, %0, %cst_76 {dimension_numbers = #tpu.dot_dimension_numbers<[1], [0], [0], [1], [0, 0, 1, 1], [], []>} : vector<8x128xbf16>, vector<128x512xbf16>, vector<8x512xf32> -> vector<8x512xf32>
    %213 = arith.addf %210, %212 : vector<8x512xf32>
    %214 = vector.extract_strided_slice %213 {offsets = [0, 0], sizes = [8, 128], strides = [1, 1]} : vector<8x512xf32> to vector<8x128xf32>
    %cst_77 = arith.constant 5.000000e-01 : f32
    %215 = vector.broadcast %cst_77 : f32 to vector<8x128xf32>
    %216 = arith.mulf %215, %214 : vector<8x128xf32>
    %217 = math.tanh %216 : vector<8x128xf32>
    %cst_78 = arith.constant 5.000000e-01 : f32
    %218 = vector.broadcast %cst_78 : f32 to vector<8x128xf32>
    %219 = arith.mulf %218, %217 : vector<8x128xf32>
    %cst_79 = arith.constant 5.000000e-01 : f32
    %220 = vector.broadcast %cst_79 : f32 to vector<8x128xf32>
    %221 = arith.addf %219, %220 : vector<8x128xf32>
    %222 = vector.extract_strided_slice %213 {offsets = [0, 128], sizes = [8, 128], strides = [1, 1]} : vector<8x512xf32> to vector<8x128xf32>
    %cst_80 = arith.constant 5.000000e-01 : f32
    %223 = vector.broadcast %cst_80 : f32 to vector<8x128xf32>
    %224 = arith.mulf %223, %222 : vector<8x128xf32>
    %225 = math.tanh %224 : vector<8x128xf32>
    %cst_81 = arith.constant 5.000000e-01 : f32
    %226 = vector.broadcast %cst_81 : f32 to vector<8x128xf32>
    %227 = arith.mulf %226, %225 : vector<8x128xf32>
    %cst_82 = arith.constant 5.000000e-01 : f32
    %228 = vector.broadcast %cst_82 : f32 to vector<8x128xf32>
    %229 = arith.addf %227, %228 : vector<8x128xf32>
    %230 = vector.extract_strided_slice %213 {offsets = [0, 256], sizes = [8, 128], strides = [1, 1]} : vector<8x512xf32> to vector<8x128xf32>
    %231 = math.tanh %230 : vector<8x128xf32>
    %232 = vector.extract_strided_slice %213 {offsets = [0, 384], sizes = [8, 128], strides = [1, 1]} : vector<8x512xf32> to vector<8x128xf32>
    %cst_83 = arith.constant 5.000000e-01 : f32
    %233 = vector.broadcast %cst_83 : f32 to vector<8x128xf32>
    %234 = arith.mulf %233, %232 : vector<8x128xf32>
    %235 = math.tanh %234 : vector<8x128xf32>
    %cst_84 = arith.constant 5.000000e-01 : f32
    %236 = vector.broadcast %cst_84 : f32 to vector<8x128xf32>
    %237 = arith.mulf %236, %235 : vector<8x128xf32>
    %cst_85 = arith.constant 5.000000e-01 : f32
    %238 = vector.broadcast %cst_85 : f32 to vector<8x128xf32>
    %239 = arith.addf %237, %238 : vector<8x128xf32>
    %240 = arith.mulf %229, %201 : vector<8x128xf32>
    %241 = arith.mulf %221, %231 : vector<8x128xf32>
    %242 = arith.addf %240, %241 : vector<8x128xf32>
    %243 = math.tanh %242 : vector<8x128xf32>
    %244 = arith.mulf %239, %243 : vector<8x128xf32>
    %245 = arith.index_cast %c5_i32 : i32 to index
    %c0_86 = arith.constant 0 : index
    %c0_87 = arith.constant 0 : index
    %246 = vector.load %arg9[%245, %c0_86, %c0_87] : memref<8x8x128xf32, #tpu.memory_space<vmem>>, vector<1x8x128xf32>
    %247 = vector.shape_cast %246 : vector<1x8x128xf32> to vector<8x128xf32>
    %248 = vector.shape_cast %244 : vector<8x128xf32> to vector<1x8x128xf32>
    tpu.vector_store %arg9[%245, %c0_86, %c0_87], %248 {strides = array<i32>} : memref<8x8x128xf32, #tpu.memory_space<vmem>>, vector<1x8x128xf32>,
    %c6_i32 = arith.constant 6 : i32
    %249 = arith.index_cast %c6_i32 : i32 to index
    %c0_88 = arith.constant 0 : index
    %c0_89 = arith.constant 0 : index
    %250 = vector.load %arg0[%249, %c0_88, %c0_89] : memref<8x8x512xf32, #tpu.memory_space<vmem>>, vector<1x8x512xf32>
    %251 = vector.shape_cast %250 : vector<1x8x512xf32> to vector<8x512xf32>
    %252 = arith.truncf %244 : vector<8x128xf32> to vector<8x128xbf16>
    %cst_90 = arith.constant dense<0.000000e+00> : vector<8x512xf32>
    %253 = tpu.matmul %252, %0, %cst_90 {dimension_numbers = #tpu.dot_dimension_numbers<[1], [0], [0], [1], [0, 0, 1, 1], [], []>} : vector<8x128xbf16>, vector<128x512xbf16>, vector<8x512xf32> -> vector<8x512xf32>
    %254 = arith.addf %251, %253 : vector<8x512xf32>
    %255 = vector.extract_strided_slice %254 {offsets = [0, 0], sizes = [8, 128], strides = [1, 1]} : vector<8x512xf32> to vector<8x128xf32>
    %cst_91 = arith.constant 5.000000e-01 : f32
    %256 = vector.broadcast %cst_91 : f32 to vector<8x128xf32>
    %257 = arith.mulf %256, %255 : vector<8x128xf32>
    %258 = math.tanh %257 : vector<8x128xf32>
    %cst_92 = arith.constant 5.000000e-01 : f32
    %259 = vector.broadcast %cst_92 : f32 to vector<8x128xf32>
    %260 = arith.mulf %259, %258 : vector<8x128xf32>
    %cst_93 = arith.constant 5.000000e-01 : f32
    %261 = vector.broadcast %cst_93 : f32 to vector<8x128xf32>
    %262 = arith.addf %260, %261 : vector<8x128xf32>
    %263 = vector.extract_strided_slice %254 {offsets = [0, 128], sizes = [8, 128], strides = [1, 1]} : vector<8x512xf32> to vector<8x128xf32>
    %cst_94 = arith.constant 5.000000e-01 : f32
    %264 = vector.broadcast %cst_94 : f32 to vector<8x128xf32>
    %265 = arith.mulf %264, %263 : vector<8x128xf32>
    %266 = math.tanh %265 : vector<8x128xf32>
    %cst_95 = arith.constant 5.000000e-01 : f32
    %267 = vector.broadcast %cst_95 : f32 to vector<8x128xf32>
    %268 = arith.mulf %267, %266 : vector<8x128xf32>
    %cst_96 = arith.constant 5.000000e-01 : f32
    %269 = vector.broadcast %cst_96 : f32 to vector<8x128xf32>
    %270 = arith.addf %268, %269 : vector<8x128xf32>
    %271 = vector.extract_strided_slice %254 {offsets = [0, 256], sizes = [8, 128], strides = [1, 1]} : vector<8x512xf32> to vector<8x128xf32>
    %272 = math.tanh %271 : vector<8x128xf32>
    %273 = vector.extract_strided_slice %254 {offsets = [0, 384], sizes = [8, 128], strides = [1, 1]} : vector<8x512xf32> to vector<8x128xf32>
    %cst_97 = arith.constant 5.000000e-01 : f32
    %274 = vector.broadcast %cst_97 : f32 to vector<8x128xf32>
    %275 = arith.mulf %274, %273 : vector<8x128xf32>
    %276 = math.tanh %275 : vector<8x128xf32>
    %cst_98 = arith.constant 5.000000e-01 : f32
    %277 = vector.broadcast %cst_98 : f32 to vector<8x128xf32>
    %278 = arith.mulf %277, %276 : vector<8x128xf32>
    %cst_99 = arith.constant 5.000000e-01 : f32
    %279 = vector.broadcast %cst_99 : f32 to vector<8x128xf32>
    %280 = arith.addf %278, %279 : vector<8x128xf32>
    %281 = arith.mulf %270, %242 : vector<8x128xf32>
    %282 = arith.mulf %262, %272 : vector<8x128xf32>
    %283 = arith.addf %281, %282 : vector<8x128xf32>
    %284 = math.tanh %283 : vector<8x128xf32>
    %285 = arith.mulf %280, %284 : vector<8x128xf32>
    %286 = arith.index_cast %c6_i32 : i32 to index
    %c0_100 = arith.constant 0 : index
    %c0_101 = arith.constant 0 : index
    %287 = vector.load %arg9[%286, %c0_100, %c0_101] : memref<8x8x128xf32, #tpu.memory_space<vmem>>, vector<1x8x128xf32>
    %288 = vector.shape_cast %287 : vector<1x8x128xf32> to vector<8x128xf32>
    %289 = vector.shape_cast %285 : vector<8x128xf32> to vector<1x8x128xf32>
    tpu.vector_store %arg9[%286, %c0_100, %c0_101], %289 {strides = array<i32>} : memref<8x8x128xf32, #tpu.memory_space<vmem>>, vector<1x8x128xf32>,
    %c7_i32 = arith.constant 7 : i32
    %290 = arith.index_cast %c7_i32 : i32 to index
    %c0_102 = arith.constant 0 : index
    %c0_103 = arith.constant 0 : index
    %291 = vector.load %arg0[%290, %c0_102, %c0_103] : memref<8x8x512xf32, #tpu.memory_space<vmem>>, vector<1x8x512xf32>
    %292 = vector.shape_cast %291 : vector<1x8x512xf32> to vector<8x512xf32>
    %293 = arith.truncf %285 : vector<8x128xf32> to vector<8x128xbf16>
    %cst_104 = arith.constant dense<0.000000e+00> : vector<8x512xf32>
    %294 = tpu.matmul %293, %0, %cst_104 {dimension_numbers = #tpu.dot_dimension_numbers<[1], [0], [0], [1], [0, 0, 1, 1], [], []>} : vector<8x128xbf16>, vector<128x512xbf16>, vector<8x512xf32> -> vector<8x512xf32>
    %295 = arith.addf %292, %294 : vector<8x512xf32>
    %296 = vector.extract_strided_slice %295 {offsets = [0, 0], sizes = [8, 128], strides = [1, 1]} : vector<8x512xf32> to vector<8x128xf32>
    %cst_105 = arith.constant 5.000000e-01 : f32
    %297 = vector.broadcast %cst_105 : f32 to vector<8x128xf32>
    %298 = arith.mulf %297, %296 : vector<8x128xf32>
    %299 = math.tanh %298 : vector<8x128xf32>
    %cst_106 = arith.constant 5.000000e-01 : f32
    %300 = vector.broadcast %cst_106 : f32 to vector<8x128xf32>
    %301 = arith.mulf %300, %299 : vector<8x128xf32>
    %cst_107 = arith.constant 5.000000e-01 : f32
    %302 = vector.broadcast %cst_107 : f32 to vector<8x128xf32>
    %303 = arith.addf %301, %302 : vector<8x128xf32>
    %304 = vector.extract_strided_slice %295 {offsets = [0, 128], sizes = [8, 128], strides = [1, 1]} : vector<8x512xf32> to vector<8x128xf32>
    %cst_108 = arith.constant 5.000000e-01 : f32
    %305 = vector.broadcast %cst_108 : f32 to vector<8x128xf32>
    %306 = arith.mulf %305, %304 : vector<8x128xf32>
    %307 = math.tanh %306 : vector<8x128xf32>
    %cst_109 = arith.constant 5.000000e-01 : f32
    %308 = vector.broadcast %cst_109 : f32 to vector<8x128xf32>
    %309 = arith.mulf %308, %307 : vector<8x128xf32>
    %cst_110 = arith.constant 5.000000e-01 : f32
    %310 = vector.broadcast %cst_110 : f32 to vector<8x128xf32>
    %311 = arith.addf %309, %310 : vector<8x128xf32>
    %312 = vector.extract_strided_slice %295 {offsets = [0, 256], sizes = [8, 128], strides = [1, 1]} : vector<8x512xf32> to vector<8x128xf32>
    %313 = math.tanh %312 : vector<8x128xf32>
    %314 = vector.extract_strided_slice %295 {offsets = [0, 384], sizes = [8, 128], strides = [1, 1]} : vector<8x512xf32> to vector<8x128xf32>
    %cst_111 = arith.constant 5.000000e-01 : f32
    %315 = vector.broadcast %cst_111 : f32 to vector<8x128xf32>
    %316 = arith.mulf %315, %314 : vector<8x128xf32>
    %317 = math.tanh %316 : vector<8x128xf32>
    %cst_112 = arith.constant 5.000000e-01 : f32
    %318 = vector.broadcast %cst_112 : f32 to vector<8x128xf32>
    %319 = arith.mulf %318, %317 : vector<8x128xf32>
    %cst_113 = arith.constant 5.000000e-01 : f32
    %320 = vector.broadcast %cst_113 : f32 to vector<8x128xf32>
    %321 = arith.addf %319, %320 : vector<8x128xf32>
    %322 = arith.mulf %311, %283 : vector<8x128xf32>
    %323 = arith.mulf %303, %313 : vector<8x128xf32>
    %324 = arith.addf %322, %323 : vector<8x128xf32>
    %325 = math.tanh %324 : vector<8x128xf32>
    %326 = arith.mulf %321, %325 : vector<8x128xf32>
    %327 = arith.index_cast %c7_i32 : i32 to index
    %c0_114 = arith.constant 0 : index
    %c0_115 = arith.constant 0 : index
    %328 = vector.load %arg9[%327, %c0_114, %c0_115] : memref<8x8x128xf32, #tpu.memory_space<vmem>>, vector<1x8x128xf32>
    %329 = vector.shape_cast %328 : vector<1x8x128xf32> to vector<8x128xf32>
    %330 = vector.shape_cast %326 : vector<8x128xf32> to vector<1x8x128xf32>
    tpu.vector_store %arg9[%327, %c0_114, %c0_115], %330 {strides = array<i32>} : memref<8x8x128xf32, #tpu.memory_space<vmem>>, vector<1x8x128xf32>,
    %c8_i32 = arith.constant 8 : i32
    %c0_116 = arith.constant 0 : index
    %c0_117 = arith.constant 0 : index
    %331 = vector.load %arg7[%c0_116, %c0_117] : memref<8x128xf32, #tpu.memory_space<vmem>>, vector<8x128xf32>
    tpu.vector_store %arg7[%c0_116, %c0_117], %326 {strides = array<i32>} : memref<8x128xf32, #tpu.memory_space<vmem>>, vector<8x128xf32>,
    %c0_118 = arith.constant 0 : index
    %c0_119 = arith.constant 0 : index
    %332 = vector.load %arg8[%c0_118, %c0_119] : memref<8x128xf32, #tpu.memory_space<vmem>>, vector<8x128xf32>
    tpu.vector_store %arg8[%c0_118, %c0_119], %324 {strides = array<i32>} : memref<8x128xf32, #tpu.memory_space<vmem>>, vector<8x128xf32>,
    %c0_120 = arith.constant 0 : index
    %c0_121 = arith.constant 0 : index
    %c0_122 = arith.constant 0 : index
    %333 = vector.load %arg9[%c0_120, %c0_121, %c0_122] : memref<8x8x128xf32, #tpu.memory_space<vmem>>, vector<8x8x128xf32>
    %334 = vector.shape_cast %333 : vector<8x8x128xf32> to vector<64x128xf32>
    %c0_123 = arith.constant 0 : index
    %c0_124 = arith.constant 0 : index
    %335 = vector.load %arg2[%c0_123, %c0_124] : memref<128x128xf32, #tpu.memory_space<vmem>>, vector<128x128xf32>
    %cst_125 = arith.constant dense<0.000000e+00> : vector<64x128xf32>
    %336 = tpu.matmul %334, %335, %cst_125 {dimension_numbers = #tpu.dot_dimension_numbers<[1], [0], [0], [1], [0, 0, 1, 1], [], []>, precision = #tpu.contract_precision<fp32>} : vector<64x128xf32>, vector<128x128xf32>, vector<64x128xf32> -> vector<64x128xf32>
    %c0_126 = arith.constant 0 : index
    %c0_127 = arith.constant 0 : index
    %337 = memref.load %arg3[%c0_126, %c0_127] : memref<1x1xf32, #tpu.memory_space<smem>>
    %338 = vector.broadcast %337 : f32 to vector<64x128xf32>
    %339 = arith.addf %336, %338 : vector<64x128xf32>
    %c0_128 = arith.constant 0 : index
    %c0_129 = arith.constant 0 : index
    %340 = vector.load %arg6[%c0_128, %c0_129] : memref<64x128xf32, #tpu.memory_space<vmem>>, vector<64x128xf32>
    tpu.vector_store %arg6[%c0_128, %c0_129], %339 {strides = array<i32>} : memref<64x128xf32, #tpu.memory_space<vmem>>, vector<64x128xf32>,
    return
  }
}

</mosaic_0001>

<bundles_post_ra>
// kernel: sales_lstm_forward.1
= control target key start
LH: loop header
LB: loop body
LE: loop exit
PB: predicated region body
PF: predicated region fallthrough
CT: control target
= control target key end

     0   :  { %15 = vsyncpa [#allocation5], 0  ;;  %s2764_s27 = smov [#allocation4]   ;;  %s3936_s0 = inlined_call_operand.vmem [shape: f32[8,8,512], index: 0, kind: input, shape index: {}]   ;;  %s3937_s1 = inlined_call_operand.vmem [shape: bf16[128,512], index: 1, kind: input, shape index: {}]   ;;  %s3938_s2 = inlined_call_operand.hbm [shape: f32[128,128], index: 2, kind: input, shape index: {}]   ;;  %s3939_s3 = inlined_call_operand.<no memory space> [shape: f32[1,1], index: 3, kind: input, shape index: {}]   ;;  %s3940_s4 = inlined_call_operand.vmem [shape: f32[8,128], index: 4, kind: input, shape index: {}, may-alias: {4,7}]   ;;  %s3941_s5 = inlined_call_operand.vmem [shape: f32[8,128], index: 5, kind: input, shape index: {}, may-alias: {5,8}]   ;;  %s3942_s6 = inlined_call_operand.vmem [shape: f32[64,128], index: 6, kind: output, shape index: {0}]   ;;  %s3943_s7 = inlined_call_operand.vmem [shape: f32[8,128], index: 7, kind: output, shape index: {1}, may-alias: {4,7}]   ;;  %s3944_s8 = inlined_call_operand.vmem [shape: f32[8,128], index: 8, kind: output, shape index: {2}, may-alias: {5,8}]  }
   0x1   :  { %s25_s28 = sshll.u32 %s2764_s27, 4  ;;  %s26_s28 = int_to_ptr.vmem [resolvable:$true] %s25_s28 }
   0x2   :  { %s2750_s29 = scalar_lea.vmem %s26_s28, 2048  ;;  %p2755_p1 = scmp.lt.s32.totalorder %s26_s28, %s26_s28 }
   0x3   :  { %p2751_p0 = scmp.ne.s32.totalorder %s26_s28, %s2750_s29  ;;  %p2756_p2 = scmp.lt.s32.totalorder %s2750_s29, %s2750_s29 }
   0x5   :  { %p2757_p3 = por %p2756_p2, %p2755_p1 }
   0x7   :  { %p2758_p4 = pnand %p2757_p3, %p2751_p0 }
   0x9   :  { %2761 = shalt.err (!%p2758_p4)
}
   0xa   :  { %s2765_s30 = smov 128   ;;  %s2766_s9 = smov 8  }
   0xb   :  { %31 = dma.hbm_to_vmem [thread:$0]  %s3938_s2, 2048, %s26_s28, [#allocation5], %s2765_s30, %s2765_s30, %s2766_s9  }
   0xc   :  { %2762 = dma.done.wait [#allocation5], 2048  }
   0xd   :  { %2763 = vsyncadd [#allocation5], 4294965248  ;;  %v2767_v0 = vmov 0   ;;  %v2821_v1 = vld [vmem:[%s3937_s1 + $0xe4] ss:$16 sps:$4 sm:$0xff]   ;;  %v77_v37 = vld [vmem:[%s3936_s0 + $0x8] sm:$0xff] }
   0xe   :  { %273 = vmatprep.mubr.bf16.mxu0 %v2767_v0  ;;  %314 = vmatprep.mubr.bf16.mxu1 %v2767_v0  ;;  %v2826_v2 = vld [vmem:[%s3937_s1 + $0xe0] ss:$16 sps:$4 sm:$0xff]   ;;  %v2832_v3 = vld [vmem:[%s3937_s1 + $0xec] ss:$16 sps:$4 sm:$0xff]   ;;  %v2837_v4 = vld [vmem:[%s3937_s1 + $0xe8] ss:$16 sps:$4 sm:$0xff]  }
   0xf   :  { %241 = vmatprep.subr.bf16.mxu0 %v2821_v1  ;;  %v2843_v5 = vld [vmem:[%s3937_s1 + $0xc4] ss:$16 sps:$4 sm:$0xff]   ;;  %v2848_v6 = vld [vmem:[%s3937_s1 + $0xc0] ss:$16 sps:$4 sm:$0xff]   ;;  %282 = vmatprep.subr.bf16.mxu1 %v2832_v3  ;;  %v2854_v7 = vld [vmem:[%s3937_s1 + $0xcc] ss:$16 sps:$4 sm:$0xff]  }
  0x10   :  { %242 = vmatpush1.bf16.msra.mxu0 %v2826_v2  ;;  %283 = vmatpush1.bf16.msra.mxu1 %v2837_v4  ;;  %v2861_v8 = vld [vmem:[%s3937_s1 + $0xc8] ss:$16 sps:$4 sm:$0xff]   ;;  %v2867_v9 = vld [vmem:[%s3937_s1 + $0xa4] ss:$16 sps:$4 sm:$0xff]   ;;  %v2873_v10 = vld [vmem:[%s3937_s1 + $0xa0] ss:$16 sps:$4 sm:$0xff]  }
  0x11   :  { %243 = vmatprep.subr.bf16.mxu0 %v2843_v5  ;;  %284 = vmatprep.subr.bf16.mxu1 %v2854_v7  ;;  %v2878_v11 = vld [vmem:[%s3937_s1 + $0xac] ss:$16 sps:$4 sm:$0xff]   ;;  %v2884_v12 = vld [vmem:[%s3937_s1 + $0x84] ss:$16 sps:$4 sm:$0xff]   ;;  %v2890_v13 = vld [vmem:[%s3937_s1 + $0xa8] ss:$16 sps:$4 sm:$0xff]  }
  0x12   :  { %v2896_v14 = vld [vmem:[%s3937_s1 + $0x8c] ss:$16 sps:$4 sm:$0xff]   ;;  %v2902_v15 = vld [vmem:[%s3937_s1 + $0x80] ss:$16 sps:$4 sm:$0xff]   ;;  %v2908_v16 = vld [vmem:[%s3937_s1 + $0x64] ss:$16 sps:$4 sm:$0xff]  }
  0x13   :  { %v2914_v17 = vld [vmem:[%s3937_s1 + $0x88] ss:$16 sps:$4 sm:$0xff]   ;;  %v2920_v18 = vld [vmem:[%s3937_s1 + $0x6c] ss:$16 sps:$4 sm:$0xff]   ;;  %v2926_v19 = vld [vmem:[%s3937_s1 + $0x60] ss:$16 sps:$4 sm:$0xff]  }
  0x14   :  { %244 = vmatpush1.bf16.msra.mxu0 %v2848_v6  ;;  %285 = vmatpush1.bf16.msra.mxu1 %v2861_v8  ;;  %v2932_v20 = vld [vmem:[%s3937_s1 + $0x44] ss:$16 sps:$4 sm:$0xff]   ;;  %v2938_v21 = vld [vmem:[%s3937_s1 + $0x68] ss:$16 sps:$4 sm:$0xff]   ;;  %v2944_v22 = vld [vmem:[%s3937_s1 + $0x4c] ss:$16 sps:$4 sm:$0xff]  }
  0x15   :  { %245 = vmatprep.subr.bf16.mxu0 %v2867_v9  ;;  %286 = vmatprep.subr.bf16.mxu1 %v2878_v11  ;;  %v2950_v23 = vld [vmem:[%s3937_s1 + $0x40] ss:$16 sps:$4 sm:$0xff]   ;;  %v2956_v24 = vld [vmem:[%s3937_s1 + $0x24] ss:$16 sps:$4 sm:$0xff]   ;;  %v2962_v25 = vld [vmem:[%s3937_s1 + $0x48] ss:$16 sps:$4 sm:$0xff]  }
  0x16   :  { %v2968_v26 = vld [vmem:[%s3937_s1 + $0x2c] ss:$16 sps:$4 sm:$0xff]   ;;  %v2974_v27 = vld [vmem:[%s3937_s1 + $0x20] ss:$16 sps:$4 sm:$0xff]   ;;  %v2980_v28 = vld [vmem:[%s3937_s1 + $0x4] ss:$16 sps:$4 sm:$0xff]  }
  0x17   :  { %v2986_v29 = vld [vmem:[%s3937_s1 + $0x28] ss:$16 sps:$4 sm:$0xff]   ;;  %v2992_v30 = vld [vmem:[%s3937_s1 + $0xc] ss:$16 sps:$4 sm:$0xff]   ;;  %v2998_v31 = vld [vmem:[%s3937_s1] ss:$16 sps:$4 sm:$0xff]  }
  0x18   :  { %246 = vmatpush1.bf16.msra.mxu0 %v2873_v10  ;;  %287 = vmatpush1.bf16.msra.mxu1 %v2890_v13  ;;  %v74_v32 = vld [vmem:[%s3940_s4] sm:$0xff]  ;;  %v3008_v33 = vld [vmem:[%s3937_s1 + $0x8] ss:$16 sps:$4 sm:$0xff]   ;;  %v78_v40 = vld [vmem:[%s3936_s0 + $0x10] sm:$0xff] }
  0x19   :  { %247 = vmatprep.subr.bf16.mxu0 %v2884_v12  ;;  %288 = vmatprep.subr.bf16.mxu1 %v2896_v14  ;;  %v80_v34 = vpack.c.bf16 %v74_v32, %v74_v32  ;;  %v76_v35 = vld [vmem:[%s3936_s0] sm:$0xff]  ;;  %v79_v51 = vld [vmem:[%s3936_s0 + $0x18] sm:$0xff] }
  0x1a   :  { %v75_v60 = vld [vmem:[%s3941_s5] sm:$0xff] }
  0x1c   :  { %248 = vmatpush1.bf16.msra.mxu0 %v2902_v15  ;;  %289 = vmatpush1.bf16.msra.mxu1 %v2914_v17 }
  0x1d   :  { %249 = vmatprep.subr.bf16.mxu0 %v2908_v16  ;;  %290 = vmatprep.subr.bf16.mxu1 %v2920_v18 }
  0x20   :  { %250 = vmatpush1.bf16.msra.mxu0 %v2926_v19  ;;  %291 = vmatpush1.bf16.msra.mxu1 %v2938_v21 }
  0x21   :  { %251 = vmatprep.subr.bf16.mxu0 %v2932_v20  ;;  %292 = vmatprep.subr.bf16.mxu1 %v2944_v22 }
  0x24   :  { %252 = vmatpush1.bf16.msra.mxu0 %v2950_v23  ;;  %293 = vmatpush1.bf16.msra.mxu1 %v2962_v25 }
  0x25   :  { %253 = vmatprep.subr.bf16.mxu0 %v2956_v24  ;;  %294 = vmatprep.subr.bf16.mxu1 %v2968_v26 }
  0x28   :  { %254 = vmatpush1.bf16.msra.mxu0 %v2974_v27  ;;  %295 = vmatpush1.bf16.msra.mxu1 %v2986_v29 }
  0x29   :  { %255 = vmatprep.subr.bf16.mxu0 %v2980_v28  ;;  %296 = vmatprep.subr.bf16.mxu1 %v2992_v30 }
  0x2c   :  { %256 = vmatpush1.bf16.msra.mxu0 %v2998_v31  ;;  %297 = vmatpush1.bf16.msra.mxu1 %v3008_v33 }
  0x2d   :  { %352 = vmatprep.subr.bf16.mxu0 %v2821_v1  ;;  %393 = vmatprep.subr.bf16.mxu1 %v2832_v3 }
  0x2f   :  { %274 = vmatmul.mubr.bf16.vlgmr.msra.gmra.mxu0 %v80_v34  ;;  %315 = vmatmul.mubr.bf16.vlgmr.msra.gmra.mxu1 %v80_v34 }
  0x30   :  { %353 = vmatpush1.bf16.msra.mxu0 %v2826_v2  ;;  %384 = vmatprep.mubr.bf16.mxu0 %v2767_v0 }
  0x31   :  { %354 = vmatprep.subr.bf16.mxu0 %v2843_v5  ;;  %394 = vmatpush1.bf16.msra.mxu1 %v2837_v4 }
  0x32   :  { %425 = vmatprep.mubr.bf16.mxu1 %v2767_v0  ;;  %395 = vmatprep.subr.bf16.mxu1 %v2854_v7 }
  0x34   :  { %355 = vmatpush1.bf16.msra.mxu0 %v2848_v6 }
  0x35   :  { %356 = vmatprep.subr.bf16.mxu0 %v2867_v9  ;;  %396 = vmatpush1.bf16.msra.mxu1 %v2861_v8 }
  0x36   :  { %397 = vmatprep.subr.bf16.mxu1 %v2878_v11 }
  0x38   :  { %357 = vmatpush1.bf16.msra.mxu0 %v2873_v10 }
  0x39   :  { %358 = vmatprep.subr.bf16.mxu0 %v2884_v12  ;;  %398 = vmatpush1.bf16.msra.mxu1 %v2890_v13 }
  0x3a   :  { %399 = vmatprep.subr.bf16.mxu1 %v2896_v14 }
  0x3c   :  { %359 = vmatpush1.bf16.msra.mxu0 %v2902_v15 }
  0x3d   :  { %360 = vmatprep.subr.bf16.mxu0 %v2908_v16  ;;  %400 = vmatpush1.bf16.msra.mxu1 %v2914_v17 }
  0x3e   :  { %401 = vmatprep.subr.bf16.mxu1 %v2920_v18 }
  0x40   :  { %361 = vmatpush1.bf16.msra.mxu0 %v2926_v19 }
  0x41   :  { %362 = vmatprep.subr.bf16.mxu0 %v2932_v20  ;;  %402 = vmatpush1.bf16.msra.mxu1 %v2938_v21 }
  0x42   :  { %403 = vmatprep.subr.bf16.mxu1 %v2944_v22 }
  0x44   :  { %363 = vmatpush1.bf16.msra.mxu0 %v2950_v23 }
  0x45   :  { %364 = vmatprep.subr.bf16.mxu0 %v2956_v24  ;;  %404 = vmatpush1.bf16.msra.mxu1 %v2962_v25 }
  0x46   :  { %405 = vmatprep.subr.bf16.mxu1 %v2968_v26 }
  0x48   :  { %365 = vmatpush1.bf16.msra.mxu0 %v2974_v27 }
  0x49   :  { %366 = vmatprep.subr.bf16.mxu0 %v2980_v28  ;;  %406 = vmatpush1.bf16.msra.mxu1 %v2986_v29 }
  0x4a   :  { %407 = vmatprep.subr.bf16.mxu1 %v2992_v30 }
  0x4c   :  { %367 = vmatpush1.bf16.msra.mxu0 %v2998_v31 }
  0x4d   :  { %464 = vmatprep.subr.bf16.mxu0 %v2821_v1  ;;  %408 = vmatpush1.bf16.msra.mxu1 %v3008_v33 }
  0x4e   :  { %505 = vmatprep.subr.bf16.mxu1 %v2832_v3 }
  0xef   :  { %v275_v36 = vpop.f32.mrf.mxu0  ;;  %v316_v41 = vpop.f32.mrf.mxu1 }
  0xf0   :  { %v323_v38 = vadd.f32 %v275_v36, %v76_v35  ;;  %v325_v47 = vadd.f32 %v316_v41, %v78_v40  ;;  %v2153_v40 = vld [vmem:[%s3936_s0 + $0x20] sm:$0xff] }
  0xf1   :  { %v277_v39 = vpop.f32.mrf.mxu0  ;;  %v318_v45 = vpop.f32.mrf.mxu1 }
  0xf2   :  { %v327_v42 = vmul.f32 0.5, %v323_v38  ;;  %v324_v43 = vadd.f32 %v277_v39, %v77_v37  ;;  %v326_v52 = vadd.f32 %v318_v45, %v79_v51 }
  0xf3   :  { %v279_v44 = vpop.f32.mrf.mxu0  ;;  %v320_v49 = vpop.f32.mrf.mxu1 }
  0xf4   :  { %2641 = vtanh.f32 %v327_v42  ;;  %v331_v46 = vmul.f32 0.5, %v324_v43  ;;  %v336_v53 = vmul.f32 0.5, %v326_v52  ;;  %v2154_v43 = vld [vmem:[%s3936_s0 + $0x28] sm:$0xff]  ;;  %v2155_v49 = vld [vmem:[%s3936_s0 + $0x30] sm:$0xff] }
  0xf5   :  { %v280_v48 = vpop.f32.mrf.mxu0  ;;  %v321_v50 = vpop.f32.mrf.mxu1 }
  0xf6   :  { %2643 = vtanh.f32 %v331_v46 }
  0xf7   :  { %2645 = vtanh.f32 %v325_v47 }
  0xf8   :  { %2647 = vtanh.f32 %v336_v53 }
 0x101   :  { %v2642_v54 = vpop.eup %2641 }
 0x102   :  { %v329_v55 = vmul.f32 0.5, %v2642_v54 }
 0x103   :  { %v2644_v56 = vpop.eup %2643 }
 0x104   :  { %v330_v57 = vadd.f32 0.5, %v329_v55  ;;  %v333_v58 = vmul.f32 0.5, %v2644_v56  ;;  %v2646_v59 = vpop.eup %2645  ;;  %v2156_v56 = vld [vmem:[%s3936_s0 + $0x38] sm:$0xff] }
 0x105   :  { %v2648_v34 = vpop.eup %2647 }
 0x106   :  { %v334_v61 = vadd.f32 0.5, %v333_v58  ;;  %v341_v63 = vmul.f32 %v2646_v59, %v330_v57  ;;  %v338_v35 = vmul.f32 0.5, %v2648_v34 }
 0x108   :  { %v340_v62 = vmul.f32 %v334_v61, %v75_v60  ;;  %v339_v36 = vadd.f32 0.5, %v338_v35 }
 0x10a   :  { %v3064_v32 = vadd.f32 %v341_v63, %v340_v62 }
 0x10c   :  { %2649 = vtanh.f32 %v3064_v32 }
 0x119   :  { %v2650_v37 = vpop.eup %2649 }
 0x11a   :  { %v3067_v38 = vmul.f32 %v2650_v37, %v339_v36 }
 0x11c   :  { %v351_v39 = vpack.c.bf16 %v3067_v38, %v3067_v38 }
 0x11e   :  { %385 = vmatmul.mubr.bf16.vlgmr.msra.gmra.mxu0 %v351_v39  ;;  %426 = vmatmul.mubr.bf16.vlgmr.msra.gmra.mxu1 %v351_v39 }
 0x11f   :  { %465 = vmatpush1.bf16.msra.mxu0 %v2826_v2  ;;  %506 = vmatpush1.bf16.msra.mxu1 %v2837_v4 }
 0x120   :  { %466 = vmatprep.subr.bf16.mxu0 %v2843_v5  ;;  %507 = vmatprep.subr.bf16.mxu1 %v2854_v7 }
 0x121   :  { %496 = vmatprep.mubr.bf16.mxu0 %v2767_v0  ;;  %537 = vmatprep.mubr.bf16.mxu1 %v2767_v0 }
 0x123   :  { %467 = vmatpush1.bf16.msra.mxu0 %v2848_v6  ;;  %508 = vmatpush1.bf16.msra.mxu1 %v2861_v8 }
 0x124   :  { %468 = vmatprep.subr.bf16.mxu0 %v2867_v9  ;;  %509 = vmatprep.subr.bf16.mxu1 %v2878_v11 }
 0x127   :  { %469 = vmatpush1.bf16.msra.mxu0 %v2873_v10  ;;  %510 = vmatpush1.bf16.msra.mxu1 %v2890_v13 }
 0x128   :  { %470 = vmatprep.subr.bf16.mxu0 %v2884_v12  ;;  %511 = vmatprep.subr.bf16.mxu1 %v2896_v14 }
 0x12b   :  { %471 = vmatpush1.bf16.msra.mxu0 %v2902_v15  ;;  %512 = vmatpush1.bf16.msra.mxu1 %v2914_v17 }
 0x12c   :  { %472 = vmatprep.subr.bf16.mxu0 %v2908_v16  ;;  %513 = vmatprep.subr.bf16.mxu1 %v2920_v18 }
 0x12f   :  { %473 = vmatpush1.bf16.msra.mxu0 %v2926_v19  ;;  %514 = vmatpush1.bf16.msra.mxu1 %v2938_v21 }
 0x130   :  { %474 = vmatprep.subr.bf16.mxu0 %v2932_v20  ;;  %515 = vmatprep.subr.bf16.mxu1 %v2944_v22 }
 0x133   :  { %475 = vmatpush1.bf16.msra.mxu0 %v2950_v23  ;;  %516 = vmatpush1.bf16.msra.mxu1 %v2962_v25 }
 0x134   :  { %476 = vmatprep.subr.bf16.mxu0 %v2956_v24  ;;  %517 = vmatprep.subr.bf16.mxu1 %v2968_v26 }
 0x137   :  { %477 = vmatpush1.bf16.msra.mxu0 %v2974_v27  ;;  %518 = vmatpush1.bf16.msra.mxu1 %v2986_v29 }
 0x138   :  { %478 = vmatprep.subr.bf16.mxu0 %v2980_v28  ;;  %519 = vmatprep.subr.bf16.mxu1 %v2992_v30 }
 0x13b   :  { %479 = vmatpush1.bf16.msra.mxu0 %v2998_v31  ;;  %520 = vmatpush1.bf16.msra.mxu1 %v3008_v33 }
 0x13c   :  { %576 = vmatprep.subr.bf16.mxu0 %v2821_v1  ;;  %617 = vmatprep.subr.bf16.mxu1 %v2832_v3 }
 0x1de   :  { %v386_v41 = vpop.f32.mrf.mxu0  ;;  %v427_v42 = vpop.f32.mrf.mxu1 }
 0x1df   :  { %v434_v44 = vadd.f32 %v2153_v40, %v386_v41  ;;  %v436_v55 = vadd.f32 %v2155_v49, %v427_v42 }
 0x1e0   :  { %v388_v45 = vpop.f32.mrf.mxu0  ;;  %v429_v46 = vpop.f32.mrf.mxu1 }
 0x1e1   :  { %v438_v47 = vmul.f32 0.5, %v434_v44  ;;  %v435_v48 = vadd.f32 %v2154_v43, %v388_v45  ;;  %v437_v57 = vadd.f32 %v2156_v56, %v429_v46 }
 0x1e2   :  { %v390_v50 = vpop.f32.mrf.mxu0  ;;  %v431_v51 = vpop.f32.mrf.mxu1 }
 0x1e3   :  { %2651 = vtanh.f32 %v438_v47  ;;  %v442_v52 = vmul.f32 0.5, %v435_v48  ;;  %v447_v58 = vmul.f32 0.5, %v437_v57  ;;  %v2158_v48 = vld [vmem:[%s3936_s0 + $0x48] sm:$0xff] }
 0x1e4   :  { %v391_v53 = vpop.f32.mrf.mxu0  ;;  %v432_v54 = vpop.f32.mrf.mxu1 }
 0x1e5   :  { %2653 = vtanh.f32 %v442_v52  ;;  %v2159_v54 = vld [vmem:[%s3936_s0 + $0x50] sm:$0xff] }
 0x1e6   :  { %2655 = vtanh.f32 %v436_v55 }
 0x1e7   :  { %2657 = vtanh.f32 %v447_v58 }
 0x1f0   :  { %v2652_v59 = vpop.eup %2651 }
 0x1f1   :  { %v440_v60 = vmul.f32 0.5, %v2652_v59 }
 0x1f2   :  { %v2654_v61 = vpop.eup %2653 }
 0x1f3   :  { %v441_v62 = vadd.f32 0.5, %v440_v60  ;;  %v444_v63 = vmul.f32 0.5, %v2654_v61  ;;  %v2656_v35 = vpop.eup %2655  ;;  %v2160_v61 = vld [vmem:[%s3936_s0 + $0x58] sm:$0xff] }
 0x1f4   :  { %v2658_v40 = vpop.eup %2657 }
 0x1f5   :  { %v445_v34 = vadd.f32 0.5, %v444_v63  ;;  %v452_v37 = vmul.f32 %v2656_v35, %v441_v62  ;;  %v449_v41 = vmul.f32 0.5, %v2658_v40 }
 0x1f7   :  { %v451_v36 = vmul.f32 %v445_v34, %v3064_v32  ;;  %v450_v42 = vadd.f32 0.5, %v449_v41  ;;  %v2157_v32 = vld [vmem:[%s3936_s0 + $0x40] sm:$0xff] }
 0x1f9   :  { %v3118_v39 = vadd.f32 %v452_v37, %v451_v36 }
 0x1fb   :  { %2659 = vtanh.f32 %v3118_v39 }
 0x208   :  { %v2660_v43 = vpop.eup %2659 }
 0x209   :  { %v3121_v44 = vmul.f32 %v2660_v43, %v450_v42 }
 0x20b   :  { %v463_v45 = vpack.c.bf16 %v3121_v44, %v3121_v44 }
 0x20d   :  { %497 = vmatmul.mubr.bf16.vlgmr.msra.gmra.mxu0 %v463_v45  ;;  %538 = vmatmul.mubr.bf16.vlgmr.msra.gmra.mxu1 %v463_v45 }
 0x20e   :  { %577 = vmatpush1.bf16.msra.mxu0 %v2826_v2  ;;  %618 = vmatpush1.bf16.msra.mxu1 %v2837_v4 }
 0x20f   :  { %578 = vmatprep.subr.bf16.mxu0 %v2843_v5  ;;  %619 = vmatprep.subr.bf16.mxu1 %v2854_v7 }
 0x210   :  { %608 = vmatprep.mubr.bf16.mxu0 %v2767_v0  ;;  %649 = vmatprep.mubr.bf16.mxu1 %v2767_v0 }
 0x212   :  { %579 = vmatpush1.bf16.msra.mxu0 %v2848_v6  ;;  %620 = vmatpush1.bf16.msra.mxu1 %v2861_v8 }
 0x213   :  { %580 = vmatprep.subr.bf16.mxu0 %v2867_v9  ;;  %621 = vmatprep.subr.bf16.mxu1 %v2878_v11 }
 0x216   :  { %581 = vmatpush1.bf16.msra.mxu0 %v2873_v10  ;;  %622 = vmatpush1.bf16.msra.mxu1 %v2890_v13 }
 0x217   :  { %582 = vmatprep.subr.bf16.mxu0 %v2884_v12  ;;  %623 = vmatprep.subr.bf16.mxu1 %v2896_v14 }
 0x21a   :  { %583 = vmatpush1.bf16.msra.mxu0 %v2902_v15  ;;  %624 = vmatpush1.bf16.msra.mxu1 %v2914_v17 }
 0x21b   :  { %584 = vmatprep.subr.bf16.mxu0 %v2908_v16  ;;  %625 = vmatprep.subr.bf16.mxu1 %v2920_v18 }
 0x21e   :  { %585 = vmatpush1.bf16.msra.mxu0 %v2926_v19  ;;  %626 = vmatpush1.bf16.msra.mxu1 %v2938_v21 }
 0x21f   :  { %586 = vmatprep.subr.bf16.mxu0 %v2932_v20  ;;  %627 = vmatprep.subr.bf16.mxu1 %v2944_v22 }
 0x222   :  { %587 = vmatpush1.bf16.msra.mxu0 %v2950_v23  ;;  %628 = vmatpush1.bf16.msra.mxu1 %v2962_v25 }
 0x223   :  { %588 = vmatprep.subr.bf16.mxu0 %v2956_v24  ;;  %629 = vmatprep.subr.bf16.mxu1 %v2968_v26 }
 0x226   :  { %589 = vmatpush1.bf16.msra.mxu0 %v2974_v27  ;;  %630 = vmatpush1.bf16.msra.mxu1 %v2986_v29 }
 0x227   :  { %590 = vmatprep.subr.bf16.mxu0 %v2980_v28  ;;  %631 = vmatprep.subr.bf16.mxu1 %v2992_v30 }
 0x22a   :  { %591 = vmatpush1.bf16.msra.mxu0 %v2998_v31  ;;  %632 = vmatpush1.bf16.msra.mxu1 %v3008_v33 }
 0x22b   :  { %688 = vmatprep.subr.bf16.mxu0 %v2821_v1  ;;  %729 = vmatprep.subr.bf16.mxu1 %v2832_v3 }
 0x2cd   :  { %v498_v46 = vpop.f32.mrf.mxu0  ;;  %v539_v47 = vpop.f32.mrf.mxu1 }
 0x2ce   :  { %v546_v49 = vadd.f32 %v2157_v32, %v498_v46  ;;  %v548_v60 = vadd.f32 %v2159_v54, %v539_v47  ;;  %v2162_v54 = vld [vmem:[%s3936_s0 + $0x68] sm:$0xff] }
 0x2cf   :  { %v500_v50 = vpop.f32.mrf.mxu0  ;;  %v541_v51 = vpop.f32.mrf.mxu1 }
 0x2d0   :  { %v550_v52 = vmul.f32 0.5, %v546_v49  ;;  %v547_v53 = vadd.f32 %v2158_v48, %v500_v50  ;;  %v549_v62 = vadd.f32 %v2160_v61, %v541_v51 }
 0x2d1   :  { %v502_v55 = vpop.f32.mrf.mxu0  ;;  %v543_v56 = vpop.f32.mrf.mxu1 }
 0x2d2   :  { %2661 = vtanh.f32 %v550_v52  ;;  %v554_v57 = vmul.f32 0.5, %v547_v53  ;;  %v559_v63 = vmul.f32 0.5, %v549_v62 }
 0x2d3   :  { %v503_v58 = vpop.f32.mrf.mxu0  ;;  %v544_v59 = vpop.f32.mrf.mxu1 }
 0x2d4   :  { %2663 = vtanh.f32 %v554_v57 }
 0x2d5   :  { %2665 = vtanh.f32 %v548_v60  ;;  %v2163_v60 = vld [vmem:[%s3936_s0 + $0x70] sm:$0xff] }
 0x2d6   :  { %2667 = vtanh.f32 %v559_v63 }
 0x2df   :  { %v2662_v34 = vpop.eup %2661 }
 0x2e0   :  { %v552_v35 = vmul.f32 0.5, %v2662_v34 }
 0x2e1   :  { %v2664_v36 = vpop.eup %2663 }
 0x2e2   :  { %v553_v37 = vadd.f32 0.5, %v552_v35  ;;  %v556_v40 = vmul.f32 0.5, %v2664_v36  ;;  %v2666_v42 = vpop.eup %2665 }
 0x2e3   :  { %v2668_v46 = vpop.eup %2667 }
 0x2e4   :  { %v557_v41 = vadd.f32 0.5, %v556_v40  ;;  %v564_v45 = vmul.f32 %v2666_v42, %v553_v37  ;;  %v561_v47 = vmul.f32 0.5, %v2668_v46  ;;  %v2164_v37 = vld [vmem:[%s3936_s0 + $0x78] sm:$0xff] }
 0x2e6   :  { %v563_v43 = vmul.f32 %v557_v41, %v3118_v39  ;;  %v562_v48 = vadd.f32 0.5, %v561_v47  ;;  %v2161_v39 = vld [vmem:[%s3936_s0 + $0x60] sm:$0xff] }
 0x2e8   :  { %v3172_v32 = vadd.f32 %v564_v45, %v563_v43 }
 0x2ea   :  { %2669 = vtanh.f32 %v3172_v32 }
 0x2f7   :  { %v2670_v49 = vpop.eup %2669 }
 0x2f8   :  { %v3175_v50 = vmul.f32 %v2670_v49, %v562_v48 }
 0x2fa   :  { %v575_v51 = vpack.c.bf16 %v3175_v50, %v3175_v50 }
 0x2fc   :  { %609 = vmatmul.mubr.bf16.vlgmr.msra.gmra.mxu0 %v575_v51  ;;  %650 = vmatmul.mubr.bf16.vlgmr.msra.gmra.mxu1 %v575_v51 }
 0x2fd   :  { %689 = vmatpush1.bf16.msra.mxu0 %v2826_v2  ;;  %730 = vmatpush1.bf16.msra.mxu1 %v2837_v4 }
 0x2fe   :  { %690 = vmatprep.subr.bf16.mxu0 %v2843_v5  ;;  %731 = vmatprep.subr.bf16.mxu1 %v2854_v7 }
 0x2ff   :  { %720 = vmatprep.mubr.bf16.mxu0 %v2767_v0  ;;  %761 = vmatprep.mubr.bf16.mxu1 %v2767_v0 }
 0x301   :  { %691 = vmatpush1.bf16.msra.mxu0 %v2848_v6  ;;  %732 = vmatpush1.bf16.msra.mxu1 %v2861_v8 }
 0x302   :  { %692 = vmatprep.subr.bf16.mxu0 %v2867_v9  ;;  %733 = vmatprep.subr.bf16.mxu1 %v2878_v11 }
 0x305   :  { %693 = vmatpush1.bf16.msra.mxu0 %v2873_v10  ;;  %734 = vmatpush1.bf16.msra.mxu1 %v2890_v13 }
 0x306   :  { %694 = vmatprep.subr.bf16.mxu0 %v2884_v12  ;;  %735 = vmatprep.subr.bf16.mxu1 %v2896_v14 }
 0x309   :  { %695 = vmatpush1.bf16.msra.mxu0 %v2902_v15  ;;  %736 = vmatpush1.bf16.msra.mxu1 %v2914_v17 }
 0x30a   :  { %696 = vmatprep.subr.bf16.mxu0 %v2908_v16  ;;  %737 = vmatprep.subr.bf16.mxu1 %v2920_v18 }
 0x30d   :  { %697 = vmatpush1.bf16.msra.mxu0 %v2926_v19  ;;  %738 = vmatpush1.bf16.msra.mxu1 %v2938_v21 }
 0x30e   :  { %698 = vmatprep.subr.bf16.mxu0 %v2932_v20  ;;  %739 = vmatprep.subr.bf16.mxu1 %v2944_v22 }
 0x311   :  { %699 = vmatpush1.bf16.msra.mxu0 %v2950_v23  ;;  %740 = vmatpush1.bf16.msra.mxu1 %v2962_v25 }
 0x312   :  { %700 = vmatprep.subr.bf16.mxu0 %v2956_v24  ;;  %741 = vmatprep.subr.bf16.mxu1 %v2968_v26 }
 0x315   :  { %701 = vmatpush1.bf16.msra.mxu0 %v2974_v27  ;;  %742 = vmatpush1.bf16.msra.mxu1 %v2986_v29 }
 0x316   :  { %702 = vmatprep.subr.bf16.mxu0 %v2980_v28  ;;  %743 = vmatprep.subr.bf16.mxu1 %v2992_v30 }
 0x319   :  { %703 = vmatpush1.bf16.msra.mxu0 %v2998_v31  ;;  %744 = vmatpush1.bf16.msra.mxu1 %v3008_v33 }
 0x31a   :  { %800 = vmatprep.subr.bf16.mxu0 %v2821_v1  ;;  %841 = vmatprep.subr.bf16.mxu1 %v2832_v3 }
 0x3bc   :  { %v610_v52 = vpop.f32.mrf.mxu0  ;;  %v651_v53 = vpop.f32.mrf.mxu1 }
 0x3bd   :  { %v658_v55 = vadd.f32 %v2161_v39, %v610_v52  ;;  %v660_v36 = vadd.f32 %v2163_v60, %v651_v53 }
 0x3be   :  { %v612_v56 = vpop.f32.mrf.mxu0  ;;  %v653_v57 = vpop.f32.mrf.mxu1 }
 0x3bf   :  { %v662_v58 = vmul.f32 0.5, %v658_v55  ;;  %v659_v59 = vadd.f32 %v2162_v54, %v612_v56  ;;  %v661_v40 = vadd.f32 %v2164_v37, %v653_v57 }
 0x3c0   :  { %v614_v61 = vpop.f32.mrf.mxu0  ;;  %v655_v62 = vpop.f32.mrf.mxu1 }
 0x3c1   :  { %2671 = vtanh.f32 %v662_v58  ;;  %v666_v63 = vmul.f32 0.5, %v659_v59  ;;  %v671_v41 = vmul.f32 0.5, %v661_v40  ;;  %v2166_v61 = vld [vmem:[%s3936_s0 + $0x88] sm:$0xff] }
 0x3c2   :  { %v615_v34 = vpop.f32.mrf.mxu0  ;;  %v656_v35 = vpop.f32.mrf.mxu1 }
 0x3c3   :  { %2673 = vtanh.f32 %v666_v63 }
 0x3c4   :  { %2675 = vtanh.f32 %v660_v36 }
 0x3c5   :  { %2677 = vtanh.f32 %v671_v41 }
 0x3ce   :  { %v2672_v42 = vpop.eup %2671 }
 0x3cf   :  { %v664_v43 = vmul.f32 0.5, %v2672_v42 }
 0x3d0   :  { %v2674_v45 = vpop.eup %2673 }
 0x3d1   :  { %v665_v46 = vadd.f32 0.5, %v664_v43  ;;  %v668_v47 = vmul.f32 0.5, %v2674_v45  ;;  %v2676_v49 = vpop.eup %2675 }
 0x3d2   :  { %v2678_v53 = vpop.eup %2677 }
 0x3d3   :  { %v669_v48 = vadd.f32 0.5, %v668_v47  ;;  %v676_v39 = vmul.f32 %v2676_v49, %v665_v46  ;;  %v673_v54 = vmul.f32 0.5, %v2678_v53  ;;  %v2168_v46 = vld [vmem:[%s3936_s0 + $0x98] sm:$0xff] }
 0x3d5   :  { %v675_v51 = vmul.f32 %v669_v48, %v3172_v32  ;;  %v674_v55 = vadd.f32 0.5, %v673_v54  ;;  %v2165_v32 = vld [vmem:[%s3936_s0 + $0x80] sm:$0xff] }
 0x3d7   :  { %v3226_v52 = vadd.f32 %v676_v39, %v675_v51 }
 0x3d9   :  { %2679 = vtanh.f32 %v3226_v52 }
 0x3e6   :  { %v2680_v56 = vpop.eup %2679 }
 0x3e7   :  { %v3229_v57 = vmul.f32 %v2680_v56, %v674_v55 }
 0x3e9   :  { %v687_v58 = vpack.c.bf16 %v3229_v57, %v3229_v57 }
 0x3eb   :  { %721 = vmatmul.mubr.bf16.vlgmr.msra.gmra.mxu0 %v687_v58  ;;  %762 = vmatmul.mubr.bf16.vlgmr.msra.gmra.mxu1 %v687_v58 }
 0x3ec   :  { %801 = vmatpush1.bf16.msra.mxu0 %v2826_v2  ;;  %842 = vmatpush1.bf16.msra.mxu1 %v2837_v4 }
 0x3ed   :  { %802 = vmatprep.subr.bf16.mxu0 %v2843_v5  ;;  %843 = vmatprep.subr.bf16.mxu1 %v2854_v7 }
 0x3ee   :  { %832 = vmatprep.mubr.bf16.mxu0 %v2767_v0  ;;  %873 = vmatprep.mubr.bf16.mxu1 %v2767_v0 }
 0x3f0   :  { %803 = vmatpush1.bf16.msra.mxu0 %v2848_v6  ;;  %844 = vmatpush1.bf16.msra.mxu1 %v2861_v8 }
 0x3f1   :  { %804 = vmatprep.subr.bf16.mxu0 %v2867_v9  ;;  %845 = vmatprep.subr.bf16.mxu1 %v2878_v11 }
 0x3f4   :  { %805 = vmatpush1.bf16.msra.mxu0 %v2873_v10  ;;  %846 = vmatpush1.bf16.msra.mxu1 %v2890_v13 }
 0x3f5   :  { %806 = vmatprep.subr.bf16.mxu0 %v2884_v12  ;;  %847 = vmatprep.subr.bf16.mxu1 %v2896_v14 }
 0x3f8   :  { %807 = vmatpush1.bf16.msra.mxu0 %v2902_v15  ;;  %848 = vmatpush1.bf16.msra.mxu1 %v2914_v17 }
 0x3f9   :  { %808 = vmatprep.subr.bf16.mxu0 %v2908_v16  ;;  %849 = vmatprep.subr.bf16.mxu1 %v2920_v18 }
 0x3fc   :  { %809 = vmatpush1.bf16.msra.mxu0 %v2926_v19  ;;  %850 = vmatpush1.bf16.msra.mxu1 %v2938_v21 }
 0x3fd   :  { %810 = vmatprep.subr.bf16.mxu0 %v2932_v20  ;;  %851 = vmatprep.subr.bf16.mxu1 %v2944_v22 }
 0x400   :  { %811 = vmatpush1.bf16.msra.mxu0 %v2950_v23  ;;  %852 = vmatpush1.bf16.msra.mxu1 %v2962_v25 }
 0x401   :  { %812 = vmatprep.subr.bf16.mxu0 %v2956_v24  ;;  %853 = vmatprep.subr.bf16.mxu1 %v2968_v26 }
 0x404   :  { %813 = vmatpush1.bf16.msra.mxu0 %v2974_v27  ;;  %854 = vmatpush1.bf16.msra.mxu1 %v2986_v29 }
 0x405   :  { %814 = vmatprep.subr.bf16.mxu0 %v2980_v28  ;;  %855 = vmatprep.subr.bf16.mxu1 %v2992_v30 }
 0x408   :  { %815 = vmatpush1.bf16.msra.mxu0 %v2998_v31  ;;  %856 = vmatpush1.bf16.msra.mxu1 %v3008_v33 }
 0x409   :  { %912 = vmatprep.subr.bf16.mxu0 %v2821_v1  ;;  %953 = vmatprep.subr.bf16.mxu1 %v2832_v3  ;;  %v2167_v1 = vld [vmem:[%s3936_s0 + $0x90] sm:$0xff] }
 0x4ab   :  { %v722_v59 = vpop.f32.mrf.mxu0  ;;  %v763_v60 = vpop.f32.mrf.mxu1 }
 0x4ac   :  { %v770_v62 = vadd.f32 %v2165_v32, %v722_v59  ;;  %v772_v45 = vadd.f32 %v2167_v1, %v763_v60 }
 0x4ad   :  { %v724_v63 = vpop.f32.mrf.mxu0  ;;  %v765_v34 = vpop.f32.mrf.mxu1 }
 0x4ae   :  { %v774_v35 = vmul.f32 0.5, %v770_v62  ;;  %v771_v36 = vadd.f32 %v2166_v61, %v724_v63  ;;  %v773_v47 = vadd.f32 %v2168_v46, %v765_v34 }
 0x4af   :  { %v726_v37 = vpop.f32.mrf.mxu0  ;;  %v767_v40 = vpop.f32.mrf.mxu1 }
 0x4b0   :  { %2681 = vtanh.f32 %v774_v35  ;;  %v778_v41 = vmul.f32 0.5, %v771_v36  ;;  %v783_v48 = vmul.f32 0.5, %v773_v47 }
 0x4b1   :  { %v727_v42 = vpop.f32.mrf.mxu0  ;;  %v768_v43 = vpop.f32.mrf.mxu1 }
 0x4b2   :  { %2683 = vtanh.f32 %v778_v41 }
 0x4b3   :  { %2685 = vtanh.f32 %v772_v45 }
 0x4b4   :  { %2687 = vtanh.f32 %v783_v48 }
 0x4bd   :  { %v2682_v49 = vpop.eup %2681 }
 0x4be   :  { %v776_v51 = vmul.f32 0.5, %v2682_v49 }
 0x4bf   :  { %v2684_v39 = vpop.eup %2683 }
 0x4c0   :  { %v777_v53 = vadd.f32 0.5, %v776_v51  ;;  %v780_v54 = vmul.f32 0.5, %v2684_v39  ;;  %v2686_v56 = vpop.eup %2685 }
 0x4c1   :  { %v2688_v60 = vpop.eup %2687 }
 0x4c2   :  { %v781_v55 = vadd.f32 0.5, %v780_v54  ;;  %v788_v32 = vmul.f32 %v2686_v56, %v777_v53  ;;  %v785_v61 = vmul.f32 0.5, %v2688_v60  ;;  %v2722_v53 = vld [vmem:[%s3937_s1 + $0xe0] ss:$16 sps:$4 sm:$0xff]   ;;  %v2723_v54 = vld [vmem:[%s3937_s1 + $0xe8] ss:$16 sps:$4 sm:$0xff]  }
 0x4c3   :  { %v2725_v56 = vld [vmem:[%s3937_s1 + $0xcc] ss:$16 sps:$4 sm:$0xff]  }
 0x4c4   :  { %v787_v58 = vmul.f32 %v781_v55, %v3226_v52  ;;  %v786_v62 = vadd.f32 0.5, %v785_v61  ;;  %v2724_v55 = vld [vmem:[%s3937_s1 + $0xc4] ss:$16 sps:$4 sm:$0xff]   ;;  %v2729_v60 = vld [vmem:[%s3937_s1 + $0xac] ss:$16 sps:$4 sm:$0xff]  }
 0x4c5   :  { %v2731_v61 = vld [vmem:[%s3937_s1 + $0xa8] ss:$16 sps:$4 sm:$0xff]  }
 0x4c6   :  { %v3280_v59 = vadd.f32 %v788_v32, %v787_v58  ;;  %v2726_v58 = vld [vmem:[%s3937_s1 + $0xc0] ss:$16 sps:$4 sm:$0xff]   ;;  %v2727_v32 = vld [vmem:[%s3937_s1 + $0xc8] ss:$16 sps:$4 sm:$0xff]  }
 0x4c8   :  { %2689 = vtanh.f32 %v3280_v59 }
 0x4d5   :  { %v2690_v63 = vpop.eup %2689 }
 0x4d6   :  { %v3283_v34 = vmul.f32 %v2690_v63, %v786_v62  ;;  %v2732_v62 = vld [vmem:[%s3937_s1 + $0x84] ss:$16 sps:$4 sm:$0xff]   ;;  %v2733_v63 = vld [vmem:[%s3937_s1 + $0x8c] ss:$16 sps:$4 sm:$0xff]  }
 0x4d8   :  { %v799_v35 = vpack.c.bf16 %v3283_v34, %v3283_v34 }
 0x4da   :  { %833 = vmatmul.mubr.bf16.vlgmr.msra.gmra.mxu0 %v799_v35  ;;  %874 = vmatmul.mubr.bf16.vlgmr.msra.gmra.mxu1 %v799_v35  ;;  %v2734_v35 = vld [vmem:[%s3937_s1 + $0x80] ss:$16 sps:$4 sm:$0xff]  }
 0x4db   :  { %913 = vmatpush1.bf16.msra.mxu0 %v2826_v2  ;;  %954 = vmatpush1.bf16.msra.mxu1 %v2837_v4  ;;  %v2721_v2 = vld [vmem:[%s3937_s1 + $0xe4] ss:$16 sps:$4 sm:$0xff]  }
 0x4dc   :  { %914 = vmatprep.subr.bf16.mxu0 %v2843_v5  ;;  %955 = vmatprep.subr.bf16.mxu1 %v2854_v7  ;;  %v2169_v4 = vld [vmem:[%s3936_s0 + $0xa0] sm:$0xff]  ;;  %v2170_v7 = vld [vmem:[%s3936_s0 + $0xa8] sm:$0xff] }
 0x4dd   :  { %944 = vmatprep.mubr.bf16.mxu0 %v2767_v0  ;;  %985 = vmatprep.mubr.bf16.mxu1 %v2767_v0 }
 0x4df   :  { %915 = vmatpush1.bf16.msra.mxu0 %v2848_v6  ;;  %956 = vmatpush1.bf16.msra.mxu1 %v2861_v8 }
 0x4e0   :  { %916 = vmatprep.subr.bf16.mxu0 %v2867_v9  ;;  %957 = vmatprep.subr.bf16.mxu1 %v2878_v11 }
 0x4e3   :  { %917 = vmatpush1.bf16.msra.mxu0 %v2873_v10  ;;  %958 = vmatpush1.bf16.msra.mxu1 %v2890_v13  ;;  %v2171_v13 = vld [vmem:[%s3936_s0 + $0xb0] sm:$0xff] }
 0x4e4   :  { %918 = vmatprep.subr.bf16.mxu0 %v2884_v12  ;;  %959 = vmatprep.subr.bf16.mxu1 %v2896_v14 }
 0x4e7   :  { %919 = vmatpush1.bf16.msra.mxu0 %v2902_v15  ;;  %960 = vmatpush1.bf16.msra.mxu1 %v2914_v17 }
 0x4e8   :  { %920 = vmatprep.subr.bf16.mxu0 %v2908_v16  ;;  %961 = vmatprep.subr.bf16.mxu1 %v2920_v18 }
 0x4eb   :  { %921 = vmatpush1.bf16.msra.mxu0 %v2926_v19  ;;  %962 = vmatpush1.bf16.msra.mxu1 %v2938_v21  ;;  %v2172_v19 = vld [vmem:[%s3936_s0 + $0xb8] sm:$0xff] }
 0x4ec   :  { %922 = vmatprep.subr.bf16.mxu0 %v2932_v20  ;;  %963 = vmatprep.subr.bf16.mxu1 %v2944_v22 }
 0x4ef   :  { %923 = vmatpush1.bf16.msra.mxu0 %v2950_v23  ;;  %964 = vmatpush1.bf16.msra.mxu1 %v2962_v25 }
 0x4f0   :  { %924 = vmatprep.subr.bf16.mxu0 %v2956_v24  ;;  %965 = vmatprep.subr.bf16.mxu1 %v2968_v26 }
 0x4f3   :  { %925 = vmatpush1.bf16.msra.mxu0 %v2974_v27  ;;  %966 = vmatpush1.bf16.msra.mxu1 %v2986_v29 }
 0x4f4   :  { %926 = vmatprep.subr.bf16.mxu0 %v2980_v28  ;;  %967 = vmatprep.subr.bf16.mxu1 %v2992_v30 }
 0x4f7   :  { %927 = vmatpush1.bf16.msra.mxu0 %v2998_v31  ;;  %968 = vmatpush1.bf16.msra.mxu1 %v3008_v33 }
 0x4f8   :  { %1024 = vmatprep.subr.bf16.mxu0 %v2721_v2  ;;  %1065 = vmatprep.subr.bf16.mxu1 %v2832_v3  ;;  %v2735_v2 = vld [vmem:[%s3937_s1 + $0x88] ss:$16 sps:$4 sm:$0xff]  }
 0x59a   :  { %v834_v5 = vpop.f32.mrf.mxu0  ;;  %v875_v6 = vpop.f32.mrf.mxu1 }
 0x59b   :  { %v882_v8 = vadd.f32 %v2169_v4, %v834_v5  ;;  %v884_v18 = vadd.f32 %v2171_v13, %v875_v6  ;;  %v2736_v4 = vld [vmem:[%s3937_s1 + $0x64] ss:$16 sps:$4 sm:$0xff]   ;;  %v2737_v5 = vld [vmem:[%s3937_s1 + $0x6c] ss:$16 sps:$4 sm:$0xff]   ;;  %v2738_v6 = vld [vmem:[%s3937_s1 + $0x60] ss:$16 sps:$4 sm:$0xff]  }
 0x59c   :  { %v836_v9 = vpop.f32.mrf.mxu0  ;;  %v877_v10 = vpop.f32.mrf.mxu1 }
 0x59d   :  { %v886_v11 = vmul.f32 0.5, %v882_v8  ;;  %v883_v12 = vadd.f32 %v2170_v7, %v836_v9  ;;  %v885_v20 = vadd.f32 %v2172_v19, %v877_v10  ;;  %v2739_v7 = vld [vmem:[%s3937_s1 + $0x68] ss:$16 sps:$4 sm:$0xff]   ;;  %v2740_v8 = vld [vmem:[%s3937_s1 + $0x44] ss:$16 sps:$4 sm:$0xff]  }
 0x59e   :  { %v838_v3 = vpop.f32.mrf.mxu0  ;;  %v879_v14 = vpop.f32.mrf.mxu1  ;;  %v2741_v9 = vld [vmem:[%s3937_s1 + $0x4c] ss:$16 sps:$4 sm:$0xff]  }
 0x59f   :  { %2691 = vtanh.f32 %v886_v11  ;;  %v890_v15 = vmul.f32 0.5, %v883_v12  ;;  %v895_v21 = vmul.f32 0.5, %v885_v20  ;;  %v1155_v10 = vld [vmem:[#allocation4 + $0x78] sm:$0xff]  ;;  %v2175_v14 = vld [vmem:[%s3936_s0 + $0xd0] sm:$0xff] }
 0x5a0   :  { %v839_v16 = vpop.f32.mrf.mxu0  ;;  %v880_v17 = vpop.f32.mrf.mxu1 }
 0x5a1   :  { %2693 = vtanh.f32 %v890_v15 }
 0x5a2   :  { %2695 = vtanh.f32 %v884_v18 }
 0x5a3   :  { %2697 = vtanh.f32 %v895_v21  ;;  %v2176_v21 = vld [vmem:[%s3936_s0 + $0xd8] sm:$0xff] }
 0x5ac   :  { %v2692_v22 = vpop.eup %2691 }
 0x5ad   :  { %v888_v52 = vmul.f32 0.5, %v2692_v22 }
 0x5ae   :  { %v2694_v36 = vpop.eup %2693 }
 0x5af   :  { %v889_v1 = vadd.f32 0.5, %v888_v52  ;;  %v892_v37 = vmul.f32 0.5, %v2694_v36  ;;  %v2696_v41 = vpop.eup %2695 }
 0x5b0   :  { %v2698_v46 = vpop.eup %2697 }
 0x5b1   :  { %v893_v40 = vadd.f32 0.5, %v892_v37  ;;  %v900_v43 = vmul.f32 %v2696_v41, %v889_v1  ;;  %v897_v47 = vmul.f32 0.5, %v2698_v46 }
 0x5b3   :  { %v899_v42 = vmul.f32 %v893_v40, %v3280_v59  ;;  %v898_v48 = vadd.f32 0.5, %v897_v47  ;;  %v2728_v59 = vld [vmem:[%s3937_s1 + $0xa4] ss:$16 sps:$4 sm:$0xff]  }
 0x5b5   :  { %v3336_v45 = vadd.f32 %v900_v43, %v899_v42 }
 0x5b7   :  { %2699 = vtanh.f32 %v3336_v45 }
 0x5c4   :  { %v2700_v49 = vpop.eup %2699 }
 0x5c5   :  { %v3339_v51 = vmul.f32 %v2700_v49, %v898_v48  ;;  %v1154_v49 = vld [vmem:[#allocation4 + $0x70] sm:$0xff] }
 0x5c7   :  { %v911_v39 = vpack.c.bf16 %v3339_v51, %v3339_v51 }
 0x5c9   :  { %945 = vmatmul.mubr.bf16.vlgmr.msra.gmra.mxu0 %v911_v39  ;;  %986 = vmatmul.mubr.bf16.vlgmr.msra.gmra.mxu1 %v911_v39  ;;  %v1153_v39 = vld [vmem:[#allocation4 + $0x68] sm:$0xff] }
 0x5ca   :  { %1025 = vmatpush1.bf16.msra.mxu0 %v2722_v53  ;;  %1066 = vmatpush1.bf16.msra.mxu1 %v2723_v54  ;;  %v3445_v53 = vand.u32 4294901760, %v1154_v49  ;;  %v3448_v54 = vand.u32 4294901760, %v3067_v38 }
 0x5cb   :  { %1026 = vmatprep.subr.bf16.mxu0 %v2724_v55  ;;  %1067 = vmatprep.subr.bf16.mxu1 %v2725_v56  ;;  %v1152_v55 = vld [vmem:[#allocation4 + $0x60] sm:$0xff]  ;;  %v3450_v56 = vand.u32 4294901760, %v1153_v39 }
 0x5cc   :  { %1056 = vmatprep.mubr.bf16.mxu0 %v2767_v0  ;;  %1097 = vmatprep.mubr.bf16.mxu1 %v2767_v0  ;;  %v2730_v0 = vld [vmem:[%s3937_s1 + $0xa0] ss:$16 sps:$4 sm:$0xff]  }
 0x5ce   :  { %1027 = vmatpush1.bf16.msra.mxu0 %v2726_v58  ;;  %1068 = vmatpush1.bf16.msra.mxu1 %v2727_v32  ;;  %v1151_v58 = vld [vmem:[#allocation4 + $0x58] sm:$0xff] }
 0x5cf   :  { %1028 = vmatprep.subr.bf16.mxu0 %v2728_v59  ;;  %1069 = vmatprep.subr.bf16.mxu1 %v2729_v60  ;;  %v3453_v59 = vsub.f32 %v1154_v49, %v3445_v53  ;;  %v3459_v60 = vsub.f32 %v3067_v38, %v3448_v54 }
 0x5d1   :  { %v3945_v38 = vand.u32 4294901760, %v3459_v60 }
 0x5d2   :  { %1029 = vmatpush1.bf16.msra.mxu0 %v2730_v0  ;;  %1070 = vmatpush1.bf16.msra.mxu1 %v2731_v61  ;;  %v1150_v0 = vld [vmem:[#allocation4 + $0x50] sm:$0xff]  ;;  %v3462_v61 = vsub.f32 %v1153_v39, %v3450_v56 }
 0x5d3   :  { %1030 = vmatprep.subr.bf16.mxu0 %v2732_v62  ;;  %1071 = vmatprep.subr.bf16.mxu1 %v2733_v63  ;;  %v3464_v62 = vand.u32 4294901760, %v1151_v58  ;;  %v1149_v63 = vld [vmem:[#allocation4 + $0x48] sm:$0xff] }
 0x5d6   :  { %1031 = vmatpush1.bf16.msra.mxu0 %v2734_v35  ;;  %1072 = vmatpush1.bf16.msra.mxu1 %v2735_v2  ;;  %v3467_v2 = vand.u32 4294901760, %v3453_v59 }
 0x5d7   :  { %1032 = vmatprep.subr.bf16.mxu0 %v2736_v4  ;;  %1073 = vmatprep.subr.bf16.mxu1 %v2737_v5  ;;  %v3472_v5 = vand.u32 4294901760, %v1150_v0 }
 0x5da   :  { %1033 = vmatpush1.bf16.msra.mxu0 %v2738_v6  ;;  %1074 = vmatpush1.bf16.msra.mxu1 %v2739_v7  ;;  %v1148_v6 = vld [vmem:[#allocation4 + $0x40] sm:$0xff]  ;;  %v3475_v7 = vand.u32 4294901760, %v1149_v63 }
 0x5db   :  { %1034 = vmatprep.subr.bf16.mxu0 %v2740_v8  ;;  %1075 = vmatprep.subr.bf16.mxu1 %v2741_v9  ;;  %v3478_v8 = vand.u32 4294901760, %v3462_v61  ;;  %v3481_v9 = vsub.f32 %v1151_v58, %v3464_v62 }
 0x5de   :  { %1035 = vmatpush1.bf16.msra.mxu0 %v2950_v23  ;;  %1076 = vmatpush1.bf16.msra.mxu1 %v2962_v25  ;;  %v3415_v23 = vand.u32 4294901760, %v1155_v10 }
 0x5df   :  { %1036 = vmatprep.subr.bf16.mxu0 %v2956_v24  ;;  %1077 = vmatprep.subr.bf16.mxu1 %v2968_v26 }
 0x5e0   :  { %v3419_v24 = vsub.f32 %v1155_v10, %v3415_v23 }
 0x5e2   :  { %1037 = vmatpush1.bf16.msra.mxu0 %v2974_v27  ;;  %1078 = vmatpush1.bf16.msra.mxu1 %v2986_v29  ;;  %v3422_v25 = vand.u32 4294901760, %v3419_v24 }
 0x5e3   :  { %1038 = vmatprep.subr.bf16.mxu0 %v2980_v28  ;;  %1079 = vmatprep.subr.bf16.mxu1 %v2992_v30  ;;  %v2173_v28 = vld [vmem:[%s3936_s0 + $0xc0] sm:$0xff] }
 0x5e4   :  { %v1323_v26 = vsub.f32 %v3419_v24, %v3422_v25 }
 0x5e6   :  { %1039 = vmatpush1.bf16.msra.mxu0 %v2998_v31  ;;  %1080 = vmatpush1.bf16.msra.mxu1 %v3008_v33  ;;  %v3426_v27 = vand.u32 4294901760, %v1323_v26  ;;  %v2174_v31 = vld [vmem:[%s3936_s0 + $0xc8] sm:$0xff]  ;;  %v3483_v26 = vand.u32 4294901760, %v1148_v6 }
 0x5e7   :  { %2325 = vmatprep.subr.mxu0 %v3415_v23 }
 0x5e8   :  { %2369 = vmatprep.subr.mxu1 %v3426_v27 }
 0x689   :  { %v946_v29 = vpop.f32.mrf.mxu0  ;;  %v987_v30 = vpop.f32.mrf.mxu1 }
 0x68a   :  { %v994_v33 = vadd.f32 %v2173_v28, %v946_v29  ;;  %v996_v20 = vadd.f32 %v2175_v14, %v987_v30  ;;  %v1147_v28 = vld [vmem:[#allocation4 + $0x38] sm:$0xff]  ;;  %v1330_v30 = vsub.f32 %v3453_v59, %v3467_v2  ;;  %v1337_v14 = vsub.f32 %v3462_v61, %v3478_v8 }
 0x68b   :  { %v948_v11 = vpop.f32.mrf.mxu0  ;;  %v989_v12 = vpop.f32.mrf.mxu1 }
 0x68c   :  { %v998_v13 = vmul.f32 0.5, %v994_v33  ;;  %v995_v3 = vadd.f32 %v2174_v31, %v948_v11  ;;  %v997_v22 = vadd.f32 %v2176_v21, %v989_v12  ;;  %v3491_v33 = vsub.f32 %v1150_v0, %v3472_v5 }
 0x68d   :  { %v950_v15 = vpop.f32.mrf.mxu0  ;;  %v991_v16 = vpop.f32.mrf.mxu1  ;;  %v1242_v12 = vsub.f32 %v3459_v60, %v3945_v38 }
 0x68e   :  { %2701 = vtanh.f32 %v998_v13  ;;  %v1002_v17 = vmul.f32 0.5, %v995_v3  ;;  %v1007_v52 = vmul.f32 0.5, %v997_v22  ;;  %v3499_v13 = vsub.f32 %v1149_v63, %v3475_v7  ;;  %v1146_v3 = vld [vmem:[#allocation4 + $0x30] sm:$0xff] }
 0x68f   :  { %v951_v18 = vpop.f32.mrf.mxu0  ;;  %v992_v19 = vpop.f32.mrf.mxu1  ;;  %v3504_v15 = vand.u32 4294901760, %v3481_v9  ;;  %v3506_v16 = vand.u32 4294901760, %v1147_v28  ;;  %v3516_v22 = vand.u32 4294901760, %v3491_v33 }
 0x690   :  { %2703 = vtanh.f32 %v1002_v17  ;;  %v3511_v18 = vsub.f32 %v1148_v6, %v3483_v26  ;;  %v1145_v19 = vld [vmem:[#allocation4 + $0x28] sm:$0xff] }
 0x691   :  { %2705 = vtanh.f32 %v996_v20  ;;  %v1331_v20 = vand.u32 4294901760, %v1330_v30  ;;  %v1358_v49 = vsub.f32 %v3491_v33, %v3516_v22 }
 0x692   :  { %2707 = vtanh.f32 %v1007_v52  ;;  %v3518_v52 = vand.u32 4294901760, %v1146_v3 }
 0x694   :  { %v3540_v39 = vsub.f32 %v1146_v3, %v3518_v52 }
 0x696   :  { %v3561_v30 = vand.u32 4294901760, %v3540_v39 }
 0x698   :  { %3970 = vst [vmem:[#allocation10_spill] sm:$0xff] %v3561_v30 }
 0x69b   :  { %v2702_v36 = vpop.eup %2701 }
 0x69c   :  { %v1000_v1 = vmul.f32 0.5, %v2702_v36  ;;  %v1243_v36 = vand.u32 4294901760, %v1242_v12 }
 0x69d   :  { %v2704_v37 = vpop.eup %2703 }
 0x69e   :  { %v1001_v40 = vadd.f32 0.5, %v1000_v1  ;;  %v1004_v41 = vmul.f32 0.5, %v2704_v37  ;;  %v2706_v43 = vpop.eup %2705  ;;  %v3521_v1 = vand.u32 4294901760, %v3499_v13  ;;  %v1144_v37 = vld [vmem:[#allocation4 + $0x20] sm:$0xff] }
 0x69f   :  { %v2708_v32 = vpop.eup %2707 }
 0x6a0   :  { %v1005_v42 = vadd.f32 0.5, %v1004_v41  ;;  %v1012_v47 = vmul.f32 %v2706_v43, %v1001_v40  ;;  %v1009_v35 = vmul.f32 0.5, %v2708_v32  ;;  %3967 = vst [vmem:[#allocation7_spill] sm:$0xff] %v3521_v1  ;;  %v1338_v40 = vand.u32 4294901760, %v1337_v14  ;;  %v1142_v32 = vld [vmem:[#allocation4 + $0x10] sm:$0xff] }
 0x6a1   :  { %v1351_v41 = vsub.f32 %v3481_v9, %v3504_v15  ;;  %v3530_v43 = vand.u32 4294901760, %v1145_v19  ;;  %v1365_v58 = vsub.f32 %v3499_v13, %v3521_v1  ;;  %v3566_v3 = vand.u32 4294901760, %v1142_v32 }
 0x6a2   :  { %v1011_v46 = vmul.f32 %v1005_v42, %v3336_v45  ;;  %v3455_v45 = vand.u32 4294901760, %v1152_v55  ;;  %v1010_v10 = vadd.f32 0.5, %v1009_v35  ;;  %v3528_v42 = vsub.f32 %v1147_v28, %v3506_v16  ;;  %v1141_v28 = vld [vmem:[#allocation4 + $0x8] sm:$0xff] }
 0x6a3   :  { %v1352_v0 = vand.u32 4294901760, %v1351_v41  ;;  %v3552_v35 = vsub.f32 %v1145_v19, %v3530_v43  ;;  %v1366_v14 = vand.u32 4294901760, %v1365_v58 }
 0x6a4   :  { %v3442_v48 = vadd.f32 %v1012_v47, %v1011_v46  ;;  %v3470_v4 = vsub.f32 %v1152_v55, %v3455_v45  ;;  %v3534_v46 = vand.u32 4294901760, %v3511_v18  ;;  %v1143_v47 = vld [vmem:[#allocation4 + $0x18] sm:$0xff]  ;;  %v3542_v55 = vand.u32 4294901760, %v1144_v37 }
 0x6a5   :  { %v3549_v63 = vand.u32 4294901760, %v3528_v42  ;;  %v3554_v6 = vand.u32 4294901760, %v1143_v47 }
 0x6a6   :  { %2709 = vtanh.f32 %v3442_v48  ;;  %v3488_v31 = vand.u32 4294901760, %v3470_v4  ;;  %3968 = vst [vmem:[#allocation8_spill] sm:$0xff] %v3534_v46  ;;  %v3564_v12 = vsub.f32 %v1144_v37, %v3542_v55 }
 0x6a7   :  { %3969 = vst [vmem:[#allocation9_spill] sm:$0xff] %v3549_v63  ;;  %v1379_v19 = vsub.f32 %v3528_v42, %v3549_v63  ;;  %v3640_v63 = vand.u32 4294901760, %v3283_v34 }
 0x6a8   :  { %v1344_v21 = vsub.f32 %v3470_v4, %v3488_v31  ;;  %v3585_v41 = vand.u32 4294901760, %v3564_v12 }
 0x6aa   :  { %3972 = vst [vmem:[#allocation12_spill] sm:$0xff] %v3585_v41 }
 0x6b3   :  { %v2710_v29 = vpop.eup %2709 }
 0x6b4   :  { %v3493_v11 = vmul.f32 %v2710_v29, %v1010_v10  ;;  %v1372_v10 = vsub.f32 %v3511_v18, %v3534_v46  ;;  %v1359_v29 = vand.u32 4294901760, %v1358_v49  ;;  %v1380_v49 = vand.u32 4294901760, %v1379_v19 }
 0x6b5   :  { %v1400_v19 = vsub.f32 %v3564_v12, %v3585_v41  ;;  %v3653_v46 = vand.u32 4294901760, %v3339_v51 }
 0x6b6   :  { %v1023_v17 = vpack.c.bf16 %v3493_v11, %v3493_v11  ;;  %v1373_v37 = vand.u32 4294901760, %v1372_v10 }
 0x6b8   :  { %1057 = vmatmul.mubr.bf16.vlgmr.msra.gmra.mxu0 %v1023_v17  ;;  %1098 = vmatmul.mubr.bf16.vlgmr.msra.gmra.mxu1 %v1023_v17  ;;  %v1140_v17 = vld [vmem:[#allocation4] sm:$0xff] }
 0x6b9   :  { %2326 = vmatpush3.msra.mxu0 %v3415_v23  ;;  %2370 = vmatpush3.msra.mxu1 %v3426_v27  ;;  %v1345_v27 = vand.u32 4294901760, %v1344_v21  ;;  %v3576_v21 = vsub.f32 %v1143_v47, %v3554_v6  ;;  %v3590_v47 = vand.u32 4294901760, %v1140_v17 }
 0x6ba   :  { %2327 = vmatprep.subr.mxu0 %v3445_v53  ;;  %2357 = vmatprep.mubr.f32.mxu0 %v1243_v36  ;;  %v3578_v36 = vand.u32 4294901760, %v1141_v28 }
 0x6bb   :  { %2371 = vmatprep.subr.mxu1 %v1331_v20  ;;  %2401 = vmatprep.mubr.f32.mxu1 %v3448_v54 }
 0x6bc   :  { %2328 = vmatpush3.msra.mxu0 %v3445_v53  ;;  %2372 = vmatpush3.msra.mxu1 %v1331_v20  ;;  %v3573_v20 = vand.u32 4294901760, %v3552_v35  ;;  %v3600_v10 = vsub.f32 %v1141_v28, %v3578_v36  ;;  %v3616_v28 = vand.u32 4294901760, %v3175_v50 }
 0x6bd   :  { %2329 = vmatprep.subr.mxu0 %v3450_v56  ;;  %2373 = vmatprep.subr.mxu1 %v1338_v40 }
 0x6be   :  { %2330 = vmatpush3.msra.mxu0 %v3450_v56  ;;  %2374 = vmatpush3.msra.mxu1 %v1338_v40  ;;  %3971 = vst [vmem:[#allocation11_spill] sm:$0xff] %v3573_v20  ;;  %v1386_v40 = vsub.f32 %v3540_v39, %v3561_v30  ;;  %v1393_v58 = vsub.f32 %v3552_v35, %v3573_v20  ;;  %v3623_v41 = vand.u32 4294901760, %v3600_v10  ;;  %v3631_v30 = vand.u32 4294901760, %v3229_v57 }
 0x6bf   :  { %2331 = vmatprep.subr.mxu0 %v3455_v45  ;;  %2375 = vmatprep.subr.mxu1 %v1345_v27  ;;  %v3613_v20 = vsub.f32 %v1140_v17, %v3590_v47 }
 0x6c0   :  { %2332 = vmatpush3.msra.mxu0 %v3455_v45  ;;  %2376 = vmatpush3.msra.mxu1 %v1345_v27  ;;  %v3588_v27 = vsub.f32 %v1142_v32, %v3566_v3  ;;  %v3603_v32 = vand.u32 4294901760, %v3121_v44  ;;  %3975 = vst [vmem:[#allocation15_spill] sm:$0xff] %v3623_v41 }
 0x6c1   :  { %2333 = vmatprep.subr.mxu0 %v3464_v62  ;;  %2377 = vmatprep.subr.mxu1 %v1352_v0 }
 0x6c2   :  { %2334 = vmatpush3.msra.mxu0 %v3464_v62  ;;  %2378 = vmatpush3.msra.mxu1 %v1352_v0  ;;  %v3597_v0 = vand.u32 4294901760, %v3576_v21  ;;  %v3610_v38 = vand.u32 4294901760, %v3588_v27  ;;  %v3627_v17 = vsub.f32 %v3121_v44, %v3603_v32  ;;  %v3645_v44 = vsub.f32 %v3175_v50, %v3616_v28 }
 0x6c3   :  { %2335 = vmatprep.subr.mxu0 %v3472_v5  ;;  %2379 = vmatprep.subr.mxu1 %v1359_v29 }
 0x6c4   :  { %2336 = vmatpush3.msra.mxu0 %v3472_v5  ;;  %2380 = vmatpush3.msra.mxu1 %v1359_v29  ;;  %3973 = vst [vmem:[#allocation13_spill] sm:$0xff] %v3597_v0  ;;  %v1387_v29 = vand.u32 4294901760, %v1386_v40  ;;  %3974 = vst [vmem:[#allocation14_spill] sm:$0xff] %v3610_v38  ;;  %v1407_v40 = vsub.f32 %v3576_v21, %v3597_v0  ;;  %v3637_v0 = vand.u32 4294901760, %v3613_v20 }
 0x6c5   :  { %2337 = vmatprep.subr.mxu0 %v3475_v7  ;;  %2381 = vmatprep.subr.mxu1 %v1366_v14 }
 0x6c6   :  { %2338 = vmatpush3.msra.mxu0 %v3475_v7  ;;  %2382 = vmatpush3.msra.mxu1 %v1366_v14  ;;  %v1394_v14 = vand.u32 4294901760, %v1393_v58  ;;  %v1414_v58 = vsub.f32 %v3588_v27, %v3610_v38  ;;  %3976 = vst [vmem:[#allocation16_spill] sm:$0xff] %v3637_v0  ;;  %v3669_v38 = vsub.f32 %v3283_v34, %v3640_v63 }
 0x6c7   :  { %2339 = vmatprep.subr.mxu0 %v3483_v26  ;;  %2383 = vmatprep.subr.mxu1 %v1373_v37  ;;  %v3680_v34 = vsub.f32 %v3339_v51, %v3653_v46 }
 0x6c8   :  { %2340 = vmatpush3.msra.mxu0 %v3483_v26  ;;  %2384 = vmatpush3.msra.mxu1 %v1373_v37  ;;  %v1401_v37 = vand.u32 4294901760, %v1400_v19  ;;  %v1421_v19 = vsub.f32 %v3600_v10, %v3623_v41  ;;  %v1415_v50 = vand.u32 4294901760, %v1414_v58  ;;  %v3663_v41 = vand.u32 4294901760, %v3493_v11 }
 0x6c9   :  { %2341 = vmatprep.subr.mxu0 %v3506_v16  ;;  %2385 = vmatprep.subr.mxu1 %v1380_v49  ;;  %v1281_v1 = vand.u32 4294901760, %v3669_v38 }
 0x6ca   :  { %2342 = vmatpush3.msra.mxu0 %v3506_v16  ;;  %2386 = vmatpush3.msra.mxu1 %v1380_v49  ;;  %v1408_v49 = vand.u32 4294901760, %v1407_v40  ;;  %v3660_v40 = vsub.f32 %v3229_v57, %v3631_v30  ;;  %v1422_v58 = vand.u32 4294901760, %v1421_v19  ;;  %v3978_v19 = vand.u32 4294901760, %v3645_v44 }
 0x6cb   :  { %2343 = vmatprep.subr.mxu0 %v3518_v52  ;;  %2387 = vmatprep.subr.mxu1 %v1387_v29 }
 0x6cc   :  { %2344 = vmatpush3.msra.mxu0 %v3518_v52  ;;  %2388 = vmatpush3.msra.mxu1 %v1387_v29  ;;  %v1428_v29 = vsub.f32 %v3613_v20, %v3637_v0  ;;  %v3977_v0 = vand.u32 4294901760, %v3627_v17 }
 0x6cd   :  { %2345 = vmatprep.subr.mxu0 %v3530_v43  ;;  %2389 = vmatprep.subr.mxu1 %v1394_v14 }
 0x6ce   :  { %2346 = vmatpush3.msra.mxu0 %v3530_v43  ;;  %2390 = vmatpush3.msra.mxu1 %v1394_v14  ;;  %v1429_v57 = vand.u32 4294901760, %v1428_v29  ;;  %v3966_v14 = vand.u32 4294901760, %v3660_v40  ;;  %v3689_v29 = vsub.f32 %v3493_v11, %v3663_v41 }
 0x6cf   :  { %2347 = vmatprep.subr.mxu0 %v3542_v55  ;;  %2391 = vmatprep.subr.mxu1 %v1401_v37 }
 0x6d0   :  { %2348 = vmatpush3.msra.mxu0 %v3542_v55  ;;  %2392 = vmatpush3.msra.mxu1 %v1401_v37  ;;  %v1252_v37 = vsub.f32 %v3627_v17, %v3977_v0  ;;  %v1272_v0 = vsub.f32 %v3660_v40, %v3966_v14 }
 0x6d1   :  { %2349 = vmatprep.subr.mxu0 %v3554_v6  ;;  %2393 = vmatprep.subr.mxu1 %v1408_v49 }
 0x6d2   :  { %2350 = vmatpush3.msra.mxu0 %v3554_v6  ;;  %2394 = vmatpush3.msra.mxu1 %v1408_v49  ;;  %v1262_v49 = vsub.f32 %v3645_v44, %v3978_v19  ;;  %v1253_v51 = vand.u32 4294901760, %v1252_v37  ;;  %v1282_v19 = vsub.f32 %v3669_v38, %v1281_v1  ;;  %v1273_v37 = vand.u32 4294901760, %v1272_v0 }
 0x6d3   :  { %2351 = vmatprep.subr.mxu0 %v3566_v3  ;;  %2395 = vmatprep.subr.mxu1 %v1415_v50 }
 0x6d4   :  { %2352 = vmatpush3.msra.mxu0 %v3566_v3  ;;  %2396 = vmatpush3.msra.mxu1 %v1415_v50  ;;  %v1291_v50 = vand.u32 4294901760, %v3680_v34  ;;  %v1263_v11 = vand.u32 4294901760, %v1262_v49 }
 0x6d5   :  { %2353 = vmatprep.subr.mxu0 %v3578_v36  ;;  %2397 = vmatprep.subr.mxu1 %v1422_v58 }
 0x6d6   :  { %2354 = vmatpush3.msra.mxu0 %v3578_v36  ;;  %2398 = vmatpush3.msra.mxu1 %v1422_v58  ;;  %v1301_v58 = vand.u32 4294901760, %v3689_v29  ;;  %v1292_v14 = vsub.f32 %v3680_v34, %v1291_v50 }
 0x6d7   :  { %2355 = vmatprep.subr.mxu0 %v3590_v47  ;;  %2399 = vmatprep.subr.mxu1 %v1429_v57 }
 0x6d8   :  { %2356 = vmatpush3.msra.mxu0 %v3590_v47  ;;  %2400 = vmatpush3.msra.mxu1 %v1429_v57  ;;  %v1283_v57 = vand.u32 4294901760, %v1282_v19  ;;  %v1302_v49 = vsub.f32 %v3689_v29, %v1301_v58 }
 0x6d9   :  { %2358 = vmatmul.mubr.f32.vlgmr.msra.gmra.mxu0 %v1253_v51  ;;  %2402 = vmatmul.mubr.f32.vlgmr.msra.gmra.mxu1 %v3603_v32  ;;  %v1293_v51 = vand.u32 4294901760, %v1292_v14  ;;  %v2180_v14 = vld [vmem:[%s3936_s0 + $0xf8] sm:$0xff] }
 0x6da   :  { %2360 = vmatprep.mubr.f32.mxu0 %v1263_v11  ;;  %2404 = vmatprep.mubr.f32.mxu1 %v3616_v28  ;;  %v1303_v0 = vand.u32 4294901760, %v1302_v49 }
 0x6db   :  { %2457 = vmatprep.subr.mxu1 %v3415_v23  ;;  %2413 = vmatprep.subr.mxu0 %v3419_v24 }
 0x6dc   :  { %2458 = vmatpush3.msra.mxu1 %v3415_v23  ;;  %2414 = vmatpush3.msra.mxu0 %v3419_v24  ;;  %v2177_v24 = vld [vmem:[%s3936_s0 + $0xe0] sm:$0xff] }
 0x6dd   :  { %2361 = vmatmul.mubr.f32.gmra.mxu0 %v1273_v37  ;;  %2405 = vmatmul.mubr.f32.gmra.mxu1 %v3631_v30 }
 0x6de   :  { %2363 = vmatprep.mubr.f32.mxu0 %v1283_v57  ;;  %2407 = vmatprep.mubr.f32.mxu1 %v3640_v63 }
 0x6df   :  { %2459 = vmatprep.subr.mxu1 %v3445_v53  ;;  %2415 = vmatprep.subr.mxu0 %v3453_v59 }
 0x6e0   :  { %2460 = vmatpush3.msra.mxu1 %v3445_v53  ;;  %2416 = vmatpush3.msra.mxu0 %v3453_v59 }
 0x6e1   :  { %2364 = vmatmul.mubr.f32.gmra.mxu0 %v1293_v51  ;;  %2408 = vmatmul.mubr.f32.gmra.mxu1 %v3653_v46 }
 0x6e2   :  { %2366 = vmatprep.mubr.f32.mxu0 %v1303_v0  ;;  %2410 = vmatprep.mubr.f32.mxu1 %v3663_v41 }
 0x6e3   :  { %2461 = vmatprep.subr.mxu1 %v3450_v56  ;;  %2417 = vmatprep.subr.mxu0 %v3462_v61 }
 0x6e4   :  { %2462 = vmatpush3.msra.mxu1 %v3450_v56  ;;  %2418 = vmatpush3.msra.mxu0 %v3462_v61 }
 0x6e5   :  { %2463 = vmatprep.subr.mxu1 %v3455_v45  ;;  %2419 = vmatprep.subr.mxu0 %v3470_v4 }
 0x6e6   :  { %2464 = vmatpush3.msra.mxu1 %v3455_v45  ;;  %2420 = vmatpush3.msra.mxu0 %v3470_v4  ;;  %v2178_v4 = vld [vmem:[%s3936_s0 + $0xe8] sm:$0xff] }
 0x6e7   :  { %2465 = vmatprep.subr.mxu1 %v3464_v62  ;;  %2421 = vmatprep.subr.mxu0 %v3481_v9 }
 0x6e8   :  { %2466 = vmatpush3.msra.mxu1 %v3464_v62  ;;  %2422 = vmatpush3.msra.mxu0 %v3481_v9 }
 0x6e9   :  { %2467 = vmatprep.subr.mxu1 %v3472_v5  ;;  %2423 = vmatprep.subr.mxu0 %v3491_v33 }
 0x6ea   :  { %2468 = vmatpush3.msra.mxu1 %v3472_v5  ;;  %2424 = vmatpush3.msra.mxu0 %v3491_v33 }
 0x6eb   :  { %2469 = vmatprep.subr.mxu1 %v3475_v7  ;;  %2425 = vmatprep.subr.mxu0 %v3499_v13 }
 0x6ec   :  { %2470 = vmatpush3.msra.mxu1 %v3475_v7  ;;  %2426 = vmatpush3.msra.mxu0 %v3499_v13 }
 0x6ed   :  { %2471 = vmatprep.subr.mxu1 %v3483_v26  ;;  %2427 = vmatprep.subr.mxu0 %v3511_v18 }
 0x6ee   :  { %2472 = vmatpush3.msra.mxu1 %v3483_v26  ;;  %2428 = vmatpush3.msra.mxu0 %v3511_v18 }
 0x6ef   :  { %2473 = vmatprep.subr.mxu1 %v3506_v16  ;;  %2429 = vmatprep.subr.mxu0 %v3528_v42 }
 0x6f0   :  { %2474 = vmatpush3.msra.mxu1 %v3506_v16  ;;  %2430 = vmatpush3.msra.mxu0 %v3528_v42 }
 0x6f1   :  { %2475 = vmatprep.subr.mxu1 %v3518_v52  ;;  %2431 = vmatprep.subr.mxu0 %v3540_v39 }
 0x6f2   :  { %2476 = vmatpush3.msra.mxu1 %v3518_v52  ;;  %2432 = vmatpush3.msra.mxu0 %v3540_v39  ;;  %v2179_v39 = vld [vmem:[%s3936_s0 + $0xf0] sm:$0xff] }
 0x6f3   :  { %2477 = vmatprep.subr.mxu1 %v3530_v43  ;;  %2433 = vmatprep.subr.mxu0 %v3552_v35 }
 0x6f4   :  { %2478 = vmatpush3.msra.mxu1 %v3530_v43  ;;  %2434 = vmatpush3.msra.mxu0 %v3552_v35 }
 0x6f5   :  { %2479 = vmatprep.subr.mxu1 %v3542_v55  ;;  %2435 = vmatprep.subr.mxu0 %v3564_v12 }
 0x6f6   :  { %2480 = vmatpush3.msra.mxu1 %v3542_v55  ;;  %2436 = vmatpush3.msra.mxu0 %v3564_v12 }
 0x6f7   :  { %2481 = vmatprep.subr.mxu1 %v3554_v6  ;;  %2437 = vmatprep.subr.mxu0 %v3576_v21 }
 0x6f8   :  { %2482 = vmatpush3.msra.mxu1 %v3554_v6  ;;  %2438 = vmatpush3.msra.mxu0 %v3576_v21 }
 0x6f9   :  { %2483 = vmatprep.subr.mxu1 %v3566_v3  ;;  %2439 = vmatprep.subr.mxu0 %v3588_v27 }
 0x6fa   :  { %2484 = vmatpush3.msra.mxu1 %v3566_v3  ;;  %2440 = vmatpush3.msra.mxu0 %v3588_v27 }
 0x6fb   :  { %2485 = vmatprep.subr.mxu1 %v3578_v36  ;;  %2441 = vmatprep.subr.mxu0 %v3600_v10 }
 0x6fc   :  { %2486 = vmatpush3.msra.mxu1 %v3578_v36  ;;  %2442 = vmatpush3.msra.mxu0 %v3600_v10 }
 0x6fd   :  { %2487 = vmatprep.subr.mxu1 %v3590_v47  ;;  %2443 = vmatprep.subr.mxu0 %v3613_v20 }
 0x6fe   :  { %2488 = vmatpush3.msra.mxu1 %v3590_v47  ;;  %2444 = vmatpush3.msra.mxu0 %v3613_v20 }
 0x6ff   :  { %2545 = vmatprep.subr.mxu1 %v3415_v23  ;;  %2501 = vmatprep.subr.mxu0 %v3422_v25 }
 0x778   :  { %v1058_v59 = vpop.f32.mrf.mxu0  ;;  %v1099_v61 = vpop.f32.mrf.mxu1 }
 0x779   :  { %v1106_v9 = vadd.f32 %v2177_v24, %v1058_v59  ;;  %v1108_v10 = vadd.f32 %v2179_v39, %v1099_v61 }
 0x77a   :  { %v1060_v33 = vpop.f32.mrf.mxu0  ;;  %v1101_v13 = vpop.f32.mrf.mxu1 }
 0x77b   :  { %v1110_v18 = vmul.f32 0.5, %v1106_v9  ;;  %v1107_v42 = vadd.f32 %v2178_v4, %v1060_v33  ;;  %v1109_v11 = vadd.f32 %v2180_v14, %v1101_v13 }
 0x77c   :  { %v1062_v35 = vpop.f32.mrf.mxu0  ;;  %v1103_v12 = vpop.f32.mrf.mxu1 }
 0x77d   :  { %2711 = vtanh.f32 %v1110_v18  ;;  %v1114_v20 = vmul.f32 0.5, %v1107_v42  ;;  %v1119_v19 = vmul.f32 0.5, %v1109_v11  ;;  %v3979_v12 = vand.u32 4294901760, %v3459_v60 }
 0x77e   :  { %v1063_v21 = vpop.f32.mrf.mxu0  ;;  %v1104_v27 = vpop.f32.mrf.mxu1  ;;  %v3982_v11 = vand.u32 4294901760, %v3660_v40 }
 0x77f   :  { %2713 = vtanh.f32 %v1114_v20  ;;  %v3980_v21 = vand.u32 4294901760, %v3627_v17 }
 0x780   :  { %2715 = vtanh.f32 %v1108_v10  ;;  %v3981_v10 = vand.u32 4294901760, %v3645_v44 }
 0x781   :  { %2717 = vtanh.f32 %v1119_v19 }
 0x78a   :  { %v2712_v37 = vpop.eup %2711 }
 0x78b   :  { %v1112_v57 = vmul.f32 0.5, %v2712_v37 }
 0x78c   :  { %v2714_v49 = vpop.eup %2713 }
 0x78d   :  { %v1113_v51 = vadd.f32 0.5, %v1112_v57  ;;  %v1116_v0 = vmul.f32 0.5, %v2714_v49  ;;  %v2716_v59 = vpop.eup %2715 }
 0x78e   :  { %v2718_v33 = vpop.eup %2717 }
 0x78f   :  { %v1117_v24 = vadd.f32 0.5, %v1116_v0  ;;  %v1124_v9 = vmul.f32 %v2716_v59, %v1113_v51  ;;  %v1121_v13 = vmul.f32 0.5, %v2718_v33 }
 0x791   :  { %v1123_v4 = vmul.f32 %v1117_v24, %v3442_v48  ;;  %v1122_v18 = vadd.f32 0.5, %v1121_v13 }
 0x793   :  { %v1125_v61 = vadd.f32 %v1124_v9, %v1123_v4 }
 0x795   :  { %2719 = vtanh.f32 %v1125_v61  ;;  %1131 = vst [vmem:[%s3944_s8] sm:$0xff] %v1125_v61 }
 0x7a2   :  { %v2720_v42 = vpop.eup %2719 }
 0x7a3   :  { %v1127_v39 = vmul.f32 %v2720_v42, %v1122_v18 }
 0x7a5   :  { %1130 = vst [vmem:[%s3943_s7] sm:$0xff] %v1127_v39  ;;  %v3800_v35 = vand.u32 4294901760, %v1127_v39 }
 0x7a7   :  { %2411 = vmatmul.mubr.f32.gmra.mxu1 %v3800_v35  ;;  %v1310_v48 = vsub.f32 %v1127_v39, %v3800_v35 }
 0x7a8   :  { %2489 = vmatprep.mubr.f32.mxu1 %v3979_v12 }
 0x7a9   :  { %v1311_v20 = vand.u32 4294901760, %v1310_v48 }
 0x7ab   :  { %2490 = vmatmul.mubr.f32.vlgmr.msra.gmra.mxu1 %v3980_v21  ;;  %v1312_v27 = vsub.f32 %v1310_v48, %v1311_v20 }
 0x7ac   :  { %2546 = vmatpush3.msra.mxu1 %v3415_v23  ;;  %2492 = vmatprep.mubr.f32.mxu1 %v3981_v10  ;;  %v3983_v23 = vld [vmem:[#allocation7_spill] sm:$0xff] }
 0x7ad   :  { %2547 = vmatprep.subr.mxu1 %v3445_v53  ;;  %v1313_v14 = vand.u32 4294901760, %v1312_v27 }
 0x7ae   :  { %2548 = vmatpush3.msra.mxu1 %v3445_v53  ;;  %v3985_v53 = vld [vmem:[#allocation9_spill] sm:$0xff] }
 0x7af   :  { %2549 = vmatprep.subr.mxu1 %v3450_v56  ;;  %2367 = vmatmul.mubr.f32.gmra.mxu0 %v1313_v14 }
 0x7b0   :  { %2493 = vmatmul.mubr.f32.gmra.mxu1 %v3982_v11  ;;  %2445 = vmatprep.mubr.f32.mxu0 %v3459_v60  ;;  %v3989_v60 = vld [vmem:[#allocation13_spill] sm:$0xff] }
 0x7b1   :  { %2550 = vmatpush3.msra.mxu1 %v3450_v56  ;;  %2495 = vmatprep.mubr.f32.mxu1 %v1281_v1  ;;  %v3986_v56 = vld [vmem:[#allocation10_spill] sm:$0xff] }
 0x7b2   :  { %2551 = vmatprep.subr.mxu1 %v3455_v45 }
 0x7b3   :  { %2552 = vmatpush3.msra.mxu1 %v3455_v45  ;;  %2446 = vmatmul.mubr.f32.vlgmr.msra.gmra.mxu0 %v3627_v17  ;;  %v3988_v45 = vld [vmem:[#allocation12_spill] sm:$0xff] }
 0x7b4   :  { %2553 = vmatprep.subr.mxu1 %v3464_v62  ;;  %2496 = vmatmul.mubr.f32.gmra.mxu1 %v1291_v50 }
 0x7b5   :  { %2502 = vmatpush3.msra.mxu0 %v3422_v25  ;;  %2554 = vmatpush3.msra.mxu1 %v3464_v62  ;;  %v3984_v25 = vld [vmem:[#allocation8_spill] sm:$0xff]  ;;  %v3990_v62 = vld [vmem:[#allocation14_spill] sm:$0xff] }
 0x7b6   :  { %2448 = vmatprep.mubr.f32.mxu0 %v3645_v44  ;;  %2498 = vmatprep.mubr.f32.mxu1 %v1301_v58 }
 0x7b7   :  { %2503 = vmatprep.subr.mxu0 %v3467_v2  ;;  %2555 = vmatprep.subr.mxu1 %v3472_v5 }
 0x7b8   :  { %2504 = vmatpush3.msra.mxu0 %v3467_v2  ;;  %2556 = vmatpush3.msra.mxu1 %v3472_v5  ;;  %v3991_v2 = vld [vmem:[#allocation15_spill] sm:$0xff]  ;;  %v3992_v5 = vld [vmem:[#allocation16_spill] sm:$0xff] }
 0x7b9   :  { %2505 = vmatprep.subr.mxu0 %v3478_v8  ;;  %2557 = vmatprep.subr.mxu1 %v3475_v7 }
 0x7ba   :  { %2449 = vmatmul.mubr.f32.gmra.mxu0 %v3660_v40  ;;  %2499 = vmatmul.mubr.f32.gmra.mxu1 %v1311_v20 }
 0x7bb   :  { %2506 = vmatpush3.msra.mxu0 %v3478_v8  ;;  %2558 = vmatpush3.msra.mxu1 %v3475_v7  ;;  %v2359_v8 = vpop.f32.mrf.mxu0 }
 0x7bc   :  { %2451 = vmatprep.mubr.f32.mxu0 %v3669_v38  ;;  %2507 = vmatprep.subr.mxu0 %v3488_v31  ;;  %v2403_v38 = vpop.f32.mrf.mxu1 }
 0x7bd   :  { %2559 = vmatprep.subr.mxu1 %v3483_v26  ;;  %2577 = vmatprep.mubr.f32.mxu1 %v3448_v54 }
 0x7be   :  { %2508 = vmatpush3.msra.mxu0 %v3488_v31  ;;  %2560 = vmatpush3.msra.mxu1 %v3483_v26  ;;  %v1466_v7 = vpop.f32.mrf.mxu1  ;;  %v1245_v31 = vpop.f32.mrf.mxu0 }
 0x7bf   :  { %2509 = vmatprep.subr.mxu0 %v3504_v15  ;;  %2561 = vmatprep.subr.mxu1 %v3506_v16 }
 0x7c0   :  { %2452 = vmatmul.mubr.f32.gmra.mxu0 %v3680_v34  ;;  %2562 = vmatpush3.msra.mxu1 %v3506_v16  ;;  %v2406_v26 = vpop.f32.mrf.mxu1  ;;  %v2362_v16 = vpop.f32.mrf.mxu0 }
 0x7c1   :  { %2510 = vmatpush3.msra.mxu0 %v3504_v15  ;;  %2454 = vmatprep.mubr.f32.mxu0 %v3689_v29  ;;  %v1157_v29 = vstv %s3939_s3 }
 0x7c2   :  { %2511 = vmatprep.subr.mxu0 %v3516_v22  ;;  %2563 = vmatprep.subr.mxu1 %v3518_v52  ;;  %v1478_v15 = vpop.f32.mrf.mxu1  ;;  %v1256_v19 = vadd.f32 %v2359_v8, %v1157_v29  ;;  %v1246_v49 = vadd.f32 %v1245_v31, %v1157_v29  ;;  %v1276_v24 = vadd.f32 %v2362_v16, %v1157_v29 }
 0x7c3   :  { %2512 = vmatpush3.msra.mxu0 %v3516_v22  ;;  %2564 = vmatpush3.msra.mxu1 %v3518_v52  ;;  %v1265_v52 = vpop.f32.mrf.mxu0 }
 0x7c4   :  { %2513 = vmatprep.subr.mxu0 %v3983_v23  ;;  %2565 = vmatprep.subr.mxu1 %v3530_v43  ;;  %v2409_v22 = vpop.f32.mrf.mxu1  ;;  %v1473_v0 = vadd.f32 %v2403_v38, %v1256_v19  ;;  %v1467_v9 = vadd.f32 %v1466_v7, %v1246_v49  ;;  %v1266_v61 = vadd.f32 %v1265_v52, %v1157_v29 }
 0x7c5   :  { %2455 = vmatmul.mubr.f32.gmra.mxu0 %v1310_v48  ;;  %2566 = vmatpush3.msra.mxu1 %v3530_v43  ;;  %v1485_v18 = vadd.f32 %v2406_v26, %v1276_v24 }
 0x7c6   :  { %2514 = vmatpush3.msra.mxu0 %v3983_v23  ;;  %2533 = vmatprep.mubr.f32.mxu0 %v3448_v54  ;;  %v3987_v54 = vld [vmem:[#allocation11_spill] sm:$0xff]  ;;  %v1490_v1 = vpop.f32.mrf.mxu1  ;;  %v1479_v12 = vadd.f32 %v1478_v15, %v1266_v61 }
 0x7c7   :  { %2515 = vmatprep.subr.mxu0 %v3984_v25  ;;  %2567 = vmatprep.subr.mxu1 %v3542_v55 }
 0x7c8   :  { %2516 = vmatpush3.msra.mxu0 %v3984_v25  ;;  %2568 = vmatpush3.msra.mxu1 %v3542_v55  ;;  %v2365_v55 = vpop.f32.mrf.mxu0 }
 0x7c9   :  { %2517 = vmatprep.subr.mxu0 %v3985_v53  ;;  %2569 = vmatprep.subr.mxu1 %v3554_v6  ;;  %v1296_v42 = vadd.f32 %v2365_v55, %v1157_v29 }
 0x7ca   :  { %2518 = vmatpush3.msra.mxu0 %v3985_v53  ;;  %2570 = vmatpush3.msra.mxu1 %v3554_v6 }
 0x7cb   :  { %2519 = vmatprep.subr.mxu0 %v3986_v56  ;;  %2571 = vmatprep.subr.mxu1 %v3566_v3  ;;  %v1497_v11 = vadd.f32 %v2409_v22, %v1296_v42 }
 0x7cc   :  { %2520 = vmatpush3.msra.mxu0 %v3986_v56  ;;  %2572 = vmatpush3.msra.mxu1 %v3566_v3 }
 0x7cd   :  { %2521 = vmatprep.subr.mxu0 %v3987_v54  ;;  %2573 = vmatprep.subr.mxu1 %v3578_v36 }
 0x7ce   :  { %2522 = vmatpush3.msra.mxu0 %v3987_v54  ;;  %2574 = vmatpush3.msra.mxu1 %v3578_v36 }
 0x7cf   :  { %2523 = vmatprep.subr.mxu0 %v3988_v45  ;;  %2575 = vmatprep.subr.mxu1 %v3590_v47 }
 0x7d0   :  { %2524 = vmatpush3.msra.mxu0 %v3988_v45  ;;  %2576 = vmatpush3.msra.mxu1 %v3590_v47 }
 0x7d1   :  { %2525 = vmatprep.subr.mxu0 %v3989_v60  ;;  %2578 = vmatmul.mubr.f32.vlgmr.msra.gmra.mxu1 %v3603_v32 }
 0x7d2   :  { %2526 = vmatpush3.msra.mxu0 %v3989_v60  ;;  %2580 = vmatprep.mubr.f32.mxu1 %v3616_v28 }
 0x7d3   :  { %2527 = vmatprep.subr.mxu0 %v3990_v62 }
 0x7d4   :  { %2528 = vmatpush3.msra.mxu0 %v3990_v62 }
 0x7d5   :  { %2529 = vmatprep.subr.mxu0 %v3991_v2  ;;  %2581 = vmatmul.mubr.f32.gmra.mxu1 %v3631_v30 }
 0x7d6   :  { %2530 = vmatpush3.msra.mxu0 %v3991_v2  ;;  %2583 = vmatprep.mubr.f32.mxu1 %v3640_v63 }
 0x7d7   :  { %2531 = vmatprep.subr.mxu0 %v3992_v5 }
 0x7d8   :  { %2532 = vmatpush3.msra.mxu0 %v3992_v5 }
 0x7d9   :  { %2534 = vmatmul.mubr.f32.vlgmr.msra.gmra.mxu0 %v3603_v32  ;;  %2584 = vmatmul.mubr.f32.gmra.mxu1 %v3653_v46 }
 0x7da   :  { %2536 = vmatprep.mubr.f32.mxu0 %v3616_v28  ;;  %2586 = vmatprep.mubr.f32.mxu1 %v3663_v41 }
 0x7dd   :  { %2537 = vmatmul.mubr.f32.gmra.mxu0 %v3631_v30  ;;  %2587 = vmatmul.mubr.f32.gmra.mxu1 %v3800_v35 }
 0x7de   :  { %2539 = vmatprep.mubr.f32.mxu0 %v3640_v63  ;;  %v1285_v63 = vpop.f32.mrf.mxu0 }
 0x7e1   :  { %2540 = vmatmul.mubr.f32.gmra.mxu0 %v3653_v46 }
 0x7e2   :  { %2542 = vmatprep.mubr.f32.mxu0 %v3663_v41 }
 0x7e5   :  { %2543 = vmatmul.mubr.f32.gmra.mxu0 %v3800_v35  ;;  %v1286_v35 = vadd.f32 %v1285_v63, %v1157_v29 }
 0x7e7   :  { %v1491_v56 = vadd.f32 %v1490_v1, %v1286_v35 }
 0x867   :  { %v2412_v43 = vpop.f32.mrf.mxu1 }
 0x869   :  { %v1502_v6 = vpop.f32.mrf.mxu1 }
 0x86b   :  { %v2491_v30 = vpop.f32.mrf.mxu1 }
 0x86d   :  { %v1750_v3 = vpop.f32.mrf.mxu1 }
 0x86f   :  { %v2368_v46 = vpop.f32.mrf.mxu0 }
 0x870   :  { %v2494_v41 = vpop.f32.mrf.mxu1  ;;  %v1316_v27 = vadd.f32 %v2368_v46, %v1157_v29 }
 0x871   :  { %v1305_v36 = vpop.f32.mrf.mxu0 }
 0x872   :  { %v1766_v32 = vpop.f32.mrf.mxu1  ;;  %v1306_v54 = vadd.f32 %v1305_v36, %v1157_v29  ;;  %v1509_v38 = vadd.f32 %v2412_v43, %v1316_v27 }
 0x873   :  { %v2447_v47 = vpop.f32.mrf.mxu0 }
 0x874   :  { %v2497_v17 = vpop.f32.mrf.mxu1  ;;  %v1620_v33 = vadd.f32 %v2447_v47, %v1473_v0  ;;  %v1503_v22 = vadd.f32 %v1502_v6, %v1306_v54 }
 0x875   :  { %v1612_v28 = vpop.f32.mrf.mxu0 }
 0x876   :  { %v1782_v40 = vpop.f32.mrf.mxu1  ;;  %v1613_v39 = vadd.f32 %v1612_v28, %v1467_v9  ;;  %v1759_v21 = vadd.f32 %v2491_v30, %v1620_v33 }
 0x878   :  { %v1751_v53 = vadd.f32 %v1750_v3, %v1613_v39 }
 0x87a   :  { %v2450_v44 = vpop.f32.mrf.mxu0  ;;  %v3906_v50 = vpop.f32.mrf.mxu1 }
 0x87b   :  { %v1634_v20 = vadd.f32 %v2450_v44, %v1485_v18 }
 0x87c   :  { %v1626_v34 = vpop.f32.mrf.mxu0  ;;  %v3908_v37 = vpop.f32.mrf.mxu1 }
 0x87d   :  { %v1627_v23 = vadd.f32 %v1626_v34, %v1479_v12  ;;  %v1775_v5 = vadd.f32 %v2494_v41, %v1634_v20 }
 0x87f   :  { %v1767_v16 = vadd.f32 %v1766_v32, %v1627_v23 }
 0x880   :  { %v2453_v58 = vpop.f32.mrf.mxu0 }
 0x881   :  { %v1648_v60 = vadd.f32 %v2453_v58, %v1497_v11 }
 0x882   :  { %v1640_v57 = vpop.f32.mrf.mxu0 }
 0x883   :  { %v1641_v26 = vadd.f32 %v1640_v57, %v1491_v56  ;;  %v1791_v43 = vadd.f32 %v2497_v17, %v1648_v60 }
 0x885   :  { %v2456_v59 = vpop.f32.mrf.mxu0  ;;  %v1783_v47 = vadd.f32 %v1782_v40, %v1641_v26 }
 0x886   :  { %v1662_v1 = vadd.f32 %v2456_v59, %v1509_v38 }
 0x887   :  { %v1654_v48 = vpop.f32.mrf.mxu0 }
 0x888   :  { %v1655_v3 = vadd.f32 %v1654_v48, %v1503_v22  ;;  %v1807_v44 = vadd.f32 %v3906_v50, %v1662_v1 }
 0x88a   :  { %v1799_v19 = vadd.f32 %v3908_v37, %v1655_v3 }
 0x891   :  { %v2579_v51 = vpop.f32.mrf.mxu1 }
 0x893   :  { %v2054_v4 = vpop.f32.mrf.mxu1 }
 0x895   :  { %v2582_v13 = vpop.f32.mrf.mxu1 }
 0x897   :  { %v2066_v10 = vpop.f32.mrf.mxu1 }
 0x899   :  { %v2535_v14 = vpop.f32.mrf.mxu0  ;;  %v2585_v7 = vpop.f32.mrf.mxu1 }
 0x89a   :  { %v1932_v25 = vadd.f32 %v2535_v14, %v1759_v21 }
 0x89b   :  { %v1925_v45 = vpop.f32.mrf.mxu0  ;;  %v2078_v30 = vpop.f32.mrf.mxu1 }
 0x89c   :  { %v2061_v62 = vadd.f32 %v2579_v51, %v1932_v25  ;;  %v1926_v2 = vadd.f32 %v1925_v45, %v1751_v53 }
 0x89d   :  { %v2538_v8 = vpop.f32.mrf.mxu0  ;;  %v2588_v17 = vpop.f32.mrf.mxu1 }
 0x89e   :  { %2101 = vst [vmem:[%s3942_s6 + $0x8] sm:$0xff] %v2061_v62  ;;  %v2055_v31 = vadd.f32 %v2054_v4, %v1926_v2  ;;  %v1944_v15 = vadd.f32 %v2538_v8, %v1775_v5 }
 0x89f   :  { %v1937_v52 = vpop.f32.mrf.mxu0  ;;  %v2090_v51 = vpop.f32.mrf.mxu1 }
 0x8a0   :  { %2100 = vst [vmem:[%s3942_s6] sm:$0xff] %v2055_v31  ;;  %v2073_v55 = vadd.f32 %v2582_v13, %v1944_v15  ;;  %v1938_v63 = vadd.f32 %v1937_v52, %v1767_v16 }
 0x8a1   :  { %v2541_v46 = vpop.f32.mrf.mxu0 }
 0x8a2   :  { %2103 = vst [vmem:[%s3942_s6 + $0x18] sm:$0xff] %v2073_v55  ;;  %v2067_v36 = vadd.f32 %v2066_v10, %v1938_v63  ;;  %v1956_v41 = vadd.f32 %v2541_v46, %v1791_v43 }
 0x8a3   :  { %v1949_v6 = vpop.f32.mrf.mxu0 }
 0x8a4   :  { %2102 = vst [vmem:[%s3942_s6 + $0x10] sm:$0xff] %v2067_v36  ;;  %v2085_v32 = vadd.f32 %v2585_v7, %v1956_v41  ;;  %v1950_v28 = vadd.f32 %v1949_v6, %v1783_v47 }
 0x8a5   :  { %v2544_v34 = vpop.f32.mrf.mxu0 }
 0x8a6   :  { %2105 = vst [vmem:[%s3942_s6 + $0x28] sm:$0xff] %v2085_v32  ;;  %v2079_v29 = vadd.f32 %v2078_v30, %v1950_v28  ;;  %v1968_v58 = vadd.f32 %v2544_v34, %v1807_v44 }
 0x8a7   :  { %v1961_v40 = vpop.f32.mrf.mxu0 }
 0x8a8   :  { %2104 = vst [vmem:[%s3942_s6 + $0x20] sm:$0xff] %v2079_v29  ;;  %v2097_v57 = vadd.f32 %v2588_v17, %v1968_v58  ;;  %v1962_v49 = vadd.f32 %v1961_v40, %v1799_v19 }
 0x8aa   :  { %2107 = vst [vmem:[%s3942_s6 + $0x38] sm:$0xff] %v2097_v57  ;;  %v2091_v50 = vadd.f32 %v2090_v51, %v1962_v49 }
 0x8ac   :  { %2106 = vst [vmem:[%s3942_s6 + $0x30] sm:$0xff] %v2091_v50 }
 0x8ad   :  { %2120 = vsyncpa [#allocation5], 1 }

</bundles_post_ra>
